<compile_context>
chip_gen: v7x
topology: tpu7x:2x2x1
jax: 0.10.0
libtpu: 0.0.40
codegen_flags: <defaults>
</compile_context>

<pallas_src>
import functools

import jax
import jax.numpy as jnp
from jax.experimental import pallas as pl
from jax.experimental.pallas import tpu as pltpu

EPS = 1e-5                      # nn.LayerNorm default eps
MXU_DTYPE = jnp.bfloat16        # MXU operand dtype; accumulation stays f32
VMEM_LIMIT_BYTES = 16 * 1024 * 1024


# ---------------------------------------------------------------------------
# In-kernel helpers (also used by the pure-JAX reference)
# ---------------------------------------------------------------------------
def _layernorm(x, gamma, beta):
    # Single-pass statistics: var = E[x^2] - E[x]^2 (clamped at 0).
    mu = jnp.mean(x, axis=-1, keepdims=True)
    ex2 = jnp.mean(x * x, axis=-1, keepdims=True)
    var = jnp.maximum(ex2 - mu * mu, 0.0)
    return (x - mu) * jax.lax.rsqrt(var + EPS) * gamma + beta


def _gelu_exact(x):
    # nn.GELU() default (approximate='none'): 0.5 * x * (1 + erf(x / sqrt(2)))
    return 0.5 * x * (1.0 + jax.lax.erf(x * (2.0 ** -0.5)))


# ---------------------------------------------------------------------------
# Whole-transformer kernel: for each depth step, LN->MAA->+res->LN->FF->+res,
# with the residual stream carried in the resident output block across depth.
# ---------------------------------------------------------------------------
def transformer_kernel(x_ref, mem_ref,
                       ln1g_ref, ln1b_ref, wqkv_ref, wm_ref, wo_ref, bo_ref,
                       ln2g_ref, ln2b_ref, w1_ref, b1_ref, w2_ref, b2_ref,
                       o_ref, *, batch_block, seq, mem_len, heads, dim_head):
    f32 = jnp.float32
    inner = heads * dim_head
    scale = dim_head ** -0.5
    layer = pl.program_id(1)

    # Layer 0: load the residual stream into the resident output block.  For
    # later layers the block already holds the previous layer's output (same
    # block index across the "arbitrary" depth axis => stays in VMEM).
    @pl.when(layer == 0)
    def _():
        o_ref[...] = x_ref[...]

    x = o_ref[...].astype(f32)                       # (rows, D) residual stream

    # ---------------- MAA block (attention with extra memory K/V) ----------
    xn = _layernorm(x, ln1g_ref[0], ln1b_ref[0])
    qkv = jnp.dot(xn.astype(MXU_DTYPE), wqkv_ref[0],
                  preferred_element_type=f32)        # (rows, 3*inner)
    mk = jnp.dot(mem_ref[...].astype(MXU_DTYPE), wm_ref[0],
                 preferred_element_type=f32)         # (rows_m, inner)

    def gather_heads(t, rows, col0):
        # (batch_block*rows, cols) -> (batch_block*heads, rows, dh) via cheap
        # static slices + one stack (no per-head matmuls, no broadcasts).
        parts = []
        for b in range(batch_block):
            for h in range(heads):
                parts.append(t[b * rows:(b + 1) * rows,
                               col0 + h * dim_head: col0 + (h + 1) * dim_head])
        return jnp.stack(parts, axis=0).astype(MXU_DTYPE)

    q = gather_heads(qkv, seq, 0)                    # (G, N, dh)
    k = gather_heads(qkv, seq, inner)                # (G, N, dh)
    v = gather_heads(qkv, seq, 2 * inner)            # (G, N, dh)
    km = gather_heads(mk, mem_len, 0)                # (G, M, dh)

    # Scores against self keys and memory keys share one softmax (no K/V concat).
    d_x = jnp.einsum('gnd,gkd->gnk', q, k, preferred_element_type=f32) * scale
    d_m = jnp.einsum('gnd,gmd->gnm', q, km, preferred_element_type=f32) * scale
    row_max = jnp.maximum(jnp.max(d_x, -1, keepdims=True),
                          jnp.max(d_m, -1, keepdims=True))
    e_x = jnp.exp(d_x - row_max)
    e_m = jnp.exp(d_m - row_max)
    inv = pl.reciprocal(jnp.sum(e_x, -1, keepdims=True)
                        + jnp.sum(e_m, -1, keepdims=True), approx=True)
    a_x = (e_x * inv).astype(MXU_DTYPE)
    a_m = (e_m * inv).astype(MXU_DTYPE)

    out_g = (jnp.einsum('gnk,gkd->gnd', a_x, v, preferred_element_type=f32)
             + jnp.einsum('gnm,gmd->gnd', a_m, km, preferred_element_type=f32))

    # Re-assemble (rows, inner) with (h d) column ordering; the head reduction
    # of the output projection then happens inside a single MXU contraction.
    per_batch = []
    for b in range(batch_block):
        per_batch.append(jnp.concatenate(
            [out_g[b * heads + h] for h in range(heads)], axis=-1))
    out_flat = jnp.concatenate(per_batch, axis=0)    # (rows, inner) f32

    y1 = jnp.dot(out_flat.astype(MXU_DTYPE), wo_ref[0],
                 preferred_element_type=f32) + bo_ref[0]
    x = x + y1                                       # residual 1

    # ---------------- FeedForward block -------------------------------------
    xn2 = _layernorm(x, ln2g_ref[0], ln2b_ref[0])
    h1 = jnp.dot(xn2.astype(MXU_DTYPE), w1_ref[0],
                 preferred_element_type=f32) + b1_ref[0]
    h1 = _gelu_exact(h1)
    y2 = jnp.dot(h1.astype(MXU_DTYPE), w2_ref[0],
                 preferred_element_type=f32) + b2_ref[0]
    o_ref[...] = (x + y2).astype(o_ref.dtype)        # residual 2


# ---------------------------------------------------------------------------
# Wrapper: one pallas_call for the whole transformer
# ---------------------------------------------------------------------------
def transformer_forward(x, memories, packed, heads, dim_head):
    B, N, D = x.shape
    M = memories.shape[1]
    depth = packed["wqkv"].shape[0]
    bb = B                          # whole batch in one block at these sizes
    rows_x, rows_m = bb * N, bb * M

    weight_names = ("ln1_g", "ln1_b", "wqkv", "wm", "wo", "bo",
                    "ln2_g", "ln2_b", "w1", "b1", "w2", "b2")
    weights = [packed[k] for k in weight_names]

    def wspec(arr):
        nrest = arr.ndim - 1
        return pl.BlockSpec((1,) + arr.shape[1:],
                            lambda b, l, _n=nrest: (l,) + (0,) * _n)

    x2d = x.reshape(B * N, D)
    mem2d = memories.reshape(B * M, D)

    out2d = pl.pallas_call(
        functools.partial(transformer_kernel, batch_block=bb, seq=N,
                          mem_len=M, heads=heads, dim_head=dim_head),
        out_shape=jax.ShapeDtypeStruct((B * N, D), x.dtype),
        grid=(B // bb, depth),
        in_specs=[pl.BlockSpec((rows_x, D), lambda b, l: (b, 0)),
                  pl.BlockSpec((rows_m, D), lambda b, l: (b, 0))]
                 + [wspec(w) for w in weights],
        out_specs=pl.BlockSpec((rows_x, D), lambda b, l: (b, 0)),
        compiler_params=pltpu.CompilerParams(
            dimension_semantics=("parallel", "arbitrary"),
            vmem_limit_bytes=VMEM_LIMIT_BYTES),
    )(x2d, mem2d, *weights)
    return out2d.reshape(B, N, D)


# ---------------------------------------------------------------------------
# Host-side parameter packing (depth-stacked, lane-dense 2-D bf16 weights)
# ---------------------------------------------------------------------------
def pack_params(layers):
    """Stack per-layer weights along a leading depth axis, MXU weights in bf16.

    Wq / Wk / Wv are fused into one (dim, 3*inner) slab so the in-kernel QKV
    projection is a single lane-dense GEMM; all other matmul weights stay 2-D
    (no per-head (H, D, dh) slabs with a 16-wide lane dim).
    """
    def stack(fn):
        return jnp.stack([fn(a, f) for (a, f) in layers], axis=0)

    return {
        "ln1_g": stack(lambda a, f: a["ln_g"].reshape(1, -1)),
        "ln1_b": stack(lambda a, f: a["ln_b"].reshape(1, -1)),
        "wqkv": stack(lambda a, f: jnp.concatenate([a["wq"], a["wkv"]], axis=1)
                      .astype(MXU_DTYPE)),
        "wm": stack(lambda a, f: a["wm"].astype(MXU_DTYPE)),
        "wo": stack(lambda a, f: a["wo"].astype(MXU_DTYPE)),
        "bo": stack(lambda a, f: a["bo"].reshape(1, -1)),
        "ln2_g": stack(lambda a, f: f["ln_g"].reshape(1, -1)),
        "ln2_b": stack(lambda a, f: f["ln_b"].reshape(1, -1)),
        "w1": stack(lambda a, f: f["w1"].astype(MXU_DTYPE)),
        "b1": stack(lambda a, f: f["b1"].reshape(1, -1)),
        "w2": stack(lambda a, f: f["w2"].astype(MXU_DTYPE)),
        "b2": stack(lambda a, f: f["b2"].reshape(1, -1)),
    }


# ---------------------------------------------------------------------------
# Deterministic parameter init (synthetic f32 "master" weights)
# ---------------------------------------------------------------------------
def init_params(key, dim, depth, heads, dim_head, mlp_dim):
    inner = heads * dim_head
    layers = []
    for _ in range(depth):
        key, *ks = jax.random.split(key, 8)
        attn_p = {
            "ln_g": jnp.ones((dim,), jnp.float32),
            "ln_b": jnp.zeros((dim,), jnp.float32),
            "wq": 0.05 * jax.random.normal(ks[0], (dim, inner), jnp.float32),
            "wkv": 0.05 * jax.random.normal(ks[1], (dim, 2 * inner), jnp.float32),
            "wm": 0.05 * jax.random.normal(ks[2], (dim, inner), jnp.float32),
            "wo": 0.05 * jax.random.normal(ks[3], (inner, dim), jnp.float32),
            "bo": 0.01 * jax.random.normal(ks[4], (dim,), jnp.float32),
        }
        key, *ks = jax.random.split(key, 6)
        ff_p = {
            "ln_g": jnp.ones((dim,), jnp.float32),
            "ln_b": jnp.zeros((dim,), jnp.float32),
            "w1": 0.05 * jax.random.normal(ks[0], (dim, mlp_dim), jnp.float32),
            "b1": 0.01 * jax.random.normal(ks[1], (mlp_dim,), jnp.float32),
            "w2": 0.05 * jax.random.normal(ks[2], (mlp_dim, dim), jnp.float32),
            "b2": 0.01 * jax.random.normal(ks[3], (dim,), jnp.float32),
        }
        layers.append((attn_p, ff_p))
    return layers


# ---------------------------------------------------------------------------
# Pure-JAX f32 reference (for correctness check)
# ---------------------------------------------------------------------------
def _ref_maa(x, mem, p, heads, dim_head):
    xn = _layernorm(x, p["ln_g"], p["ln_b"])
    inner = heads * dim_head
    q = xn @ p["wq"]
    kv = xn @ p["wkv"]
    k, v = kv[..., :inner], kv[..., inner:]
    memp = mem @ p["wm"]

    def split_heads(t):
        B, N, _ = t.shape
        return t.reshape(B, N, heads, dim_head).transpose(0, 2, 1, 3)

    q, k, v, memp = map(split_heads, (q, k, v, memp))
    k = jnp.concatenate([k, memp], axis=2)
    v = jnp.concatenate([v, memp], axis=2)
    dots = jnp.einsum("bhid,bhjd->bhij", q, k) * (dim_head ** -0.5)
    attn = jax.nn.softmax(dots, axis=-1)
    out = jnp.einsum("bhij,bhjd->bhid", attn, v)
    out = out.transpose(0, 2, 1, 3).reshape(x.shape[0], x.shape[1], inner)
    return out @ p["wo"] + p["bo"] + x


def _ref_ff(x, p):
    xn = _layernorm(x, p["ln_g"], p["ln_b"])
    h = _gelu_exact(xn @ p["w1"] + p["b1"])
    return h @ p["w2"] + p["b2"] + x


def _ref_transformer(x, mem, layers, heads, dim_head):
    for (attn_p, ff_p) in layers:
        x = _ref_maa(x, mem, attn_p, heads, dim_head)
        x = _ref_ff(x, ff_p)
    return x


# ---------------------------------------------------------------------------
if __name__ == "__main__":
    dim, depth, heads, dim_head, mlp_dim = 32, 2, 4, 16, 64
    B, N, M = 2, 8, 8

    key = jax.random.PRNGKey(0)
    k_x, k_m, k_p = jax.random.split(key, 3)
    x = jax.random.normal(k_x, (B, N, dim), jnp.float32)
    memories = jax.random.normal(k_m, (B, M, dim), jnp.float32)
    layers = init_params(k_p, dim, depth, heads, dim_head, mlp_dim)
    packed = pack_params(layers)

    fwd = jax.jit(transformer_forward, static_argnames=("heads", "dim_head"))
    out = fwd(x, memories, packed, heads=heads, dim_head=dim_head)
    out = jax.block_until_ready(out)

    ref = _ref_transformer(x, memories, layers, heads, dim_head)
    assert out.shape == (B, N, dim)
    max_err = float(jnp.max(jnp.abs(out - ref)))
    # bf16 MXU operands + approx reciprocal => looser tolerance than pure-f32.
    assert jnp.allclose(out, ref, atol=3e-2, rtol=3e-2), \
        f"mismatch vs reference (max abs err {max_err})"

    print("KERNEL_OK")
</pallas_src>

<mosaic_0001>
module attributes {stable_mosaic.version = 11 : i64} {
  func.func @transformer_kernel(%arg0: i32, %arg1: i32, %arg2: memref<16x32xf32, #tpu.memory_space<vmem>>, %arg3: memref<16x32xf32, #tpu.memory_space<vmem>>, %arg4: memref<1x1x32xf32, #tpu.memory_space<vmem>>, %arg5: memref<1x1x32xf32, #tpu.memory_space<vmem>>, %arg6: memref<1x32x192xbf16, #tpu.memory_space<vmem>>, %arg7: memref<1x32x64xbf16, #tpu.memory_space<vmem>>, %arg8: memref<1x64x32xbf16, #tpu.memory_space<vmem>>, %arg9: memref<1x1x32xf32, #tpu.memory_space<vmem>>, %arg10: memref<1x1x32xf32, #tpu.memory_space<vmem>>, %arg11: memref<1x1x32xf32, #tpu.memory_space<vmem>>, %arg12: memref<1x32x64xbf16, #tpu.memory_space<vmem>>, %arg13: memref<1x1x64xf32, #tpu.memory_space<vmem>>, %arg14: memref<1x64x32xbf16, #tpu.memory_space<vmem>>, %arg15: memref<1x1x32xf32, #tpu.memory_space<vmem>>, %arg16: memref<16x32xf32, #tpu.memory_space<vmem>>) attributes {dimension_semantics = [#tpu.dimension_semantics<parallel>, #tpu.dimension_semantics<arbitrary>], iteration_bounds = array<i64: 1, 2>, scalar_prefetch = 0 : i64, scratch_operands = 0 : i64, tpu.core_type = #tpu.core_type<tc>, window_params = [{transform_indices = @transform_0, window_bounds = array<i64: 16, 32>}, {transform_indices = @transform_1, window_bounds = array<i64: 16, 32>}, {transform_indices = @transform_2, window_bounds = array<i64: 1, 1, 32>}, {transform_indices = @transform_3, window_bounds = array<i64: 1, 1, 32>}, {transform_indices = @transform_4, window_bounds = array<i64: 1, 32, 192>}, {transform_indices = @transform_5, window_bounds = array<i64: 1, 32, 64>}, {transform_indices = @transform_6, window_bounds = array<i64: 1, 64, 32>}, {transform_indices = @transform_7, window_bounds = array<i64: 1, 1, 32>}, {transform_indices = @transform_8, window_bounds = array<i64: 1, 1, 32>}, {transform_indices = @transform_9, window_bounds = array<i64: 1, 1, 32>}, {transform_indices = @transform_10, window_bounds = array<i64: 1, 32, 64>}, {transform_indices = @transform_11, window_bounds = array<i64: 1, 1, 64>}, {transform_indices = @transform_12, window_bounds = array<i64: 1, 64, 32>}, {transform_indices = @transform_13, window_bounds = array<i64: 1, 1, 32>}, {transform_indices = @transform_14, window_bounds = array<i64: 16, 32>}]} {
    %c0_i32 = arith.constant 0 : i32
    %0 = arith.cmpi eq, %arg1, %c0_i32 : i32
    %1 = arith.extui %0 : i1 to i32
    %c0_i32_0 = arith.constant 0 : i32
    %2 = arith.cmpi ne, %1, %c0_i32_0 : i32
    scf.if %2 {
      %c0_71 = arith.constant 0 : index
      %c0_72 = arith.constant 0 : index
      %227 = vector.load %arg2[%c0_71, %c0_72] : memref<16x32xf32, #tpu.memory_space<vmem>>, vector<16x32xf32>
      %c0_73 = arith.constant 0 : index
      %c0_74 = arith.constant 0 : index
      %228 = vector.load %arg16[%c0_73, %c0_74] : memref<16x32xf32, #tpu.memory_space<vmem>>, vector<16x32xf32>
      tpu.vector_store %arg16[%c0_73, %c0_74], %227 {strides = array<i32>} : memref<16x32xf32, #tpu.memory_space<vmem>>, vector<16x32xf32>,
    } else {
    }
    %c0 = arith.constant 0 : index
    %c0_1 = arith.constant 0 : index
    %3 = vector.load %arg16[%c0, %c0_1] : memref<16x32xf32, #tpu.memory_space<vmem>>, vector<16x32xf32>
    %c0_2 = arith.constant 0 : index
    %c0_3 = arith.constant 0 : index
    %c0_4 = arith.constant 0 : index
    %4 = vector.load %arg4[%c0_2, %c0_3, %c0_4] : memref<1x1x32xf32, #tpu.memory_space<vmem>>, vector<1x1x32xf32>
    %5 = vector.shape_cast %4 : vector<1x1x32xf32> to vector<1x32xf32>
    %c0_5 = arith.constant 0 : index
    %c0_6 = arith.constant 0 : index
    %c0_7 = arith.constant 0 : index
    %6 = vector.load %arg5[%c0_5, %c0_6, %c0_7] : memref<1x1x32xf32, #tpu.memory_space<vmem>>, vector<1x1x32xf32>
    %7 = vector.shape_cast %6 : vector<1x1x32xf32> to vector<1x32xf32>
    %cst = arith.constant dense<0.000000e+00> : vector<16xf32>
    %8 = vector.multi_reduction <add>, %3, %cst [1] : vector<16x32xf32> to vector<16xf32>
    %9 = vector.shape_cast %8 : vector<16xf32> to vector<16x1xf32>
    %cst_8 = arith.constant 3.200000e+01 : f32
    %10 = vector.broadcast %cst_8 : f32 to vector<16x1xf32>
    %11 = arith.divf %9, %10 : vector<16x1xf32>
    %12 = arith.mulf %3, %3 : vector<16x32xf32>
    %cst_9 = arith.constant dense<0.000000e+00> : vector<16xf32>
    %13 = vector.multi_reduction <add>, %12, %cst_9 [1] : vector<16x32xf32> to vector<16xf32>
    %14 = vector.shape_cast %13 : vector<16xf32> to vector<16x1xf32>
    %cst_10 = arith.constant 3.200000e+01 : f32
    %15 = vector.broadcast %cst_10 : f32 to vector<16x1xf32>
    %16 = arith.divf %14, %15 : vector<16x1xf32>
    %17 = arith.mulf %11, %11 : vector<16x1xf32>
    %18 = arith.subf %16, %17 : vector<16x1xf32>
    %cst_11 = arith.constant 0.000000e+00 : f32
    %19 = vector.broadcast %cst_11 : f32 to vector<16x1xf32>
    %20 = arith.maximumf %18, %19 : vector<16x1xf32>
    %21 = vector.broadcast %11 : vector<16x1xf32> to vector<16x32xf32>
    %22 = arith.subf %3, %21 : vector<16x32xf32>
    %cst_12 = arith.constant 9.99999974E-6 : f32
    %23 = vector.broadcast %cst_12 : f32 to vector<16x1xf32>
    %24 = arith.addf %20, %23 : vector<16x1xf32>
    %25 = math.rsqrt %24 : vector<16x1xf32>
    %26 = vector.broadcast %25 : vector<16x1xf32> to vector<16x32xf32>
    %27 = arith.mulf %22, %26 : vector<16x32xf32>
    %28 = vector.broadcast %5 : vector<1x32xf32> to vector<16x32xf32>
    %29 = arith.mulf %27, %28 : vector<16x32xf32>
    %30 = vector.broadcast %7 : vector<1x32xf32> to vector<16x32xf32>
    %31 = arith.addf %29, %30 : vector<16x32xf32>
    %32 = arith.truncf %31 : vector<16x32xf32> to vector<16x32xbf16>
    %c0_13 = arith.constant 0 : index
    %c0_14 = arith.constant 0 : index
    %c0_15 = arith.constant 0 : index
    %33 = vector.load %arg6[%c0_13, %c0_14, %c0_15] : memref<1x32x192xbf16, #tpu.memory_space<vmem>>, vector<1x32x192xbf16>
    %34 = vector.shape_cast %33 : vector<1x32x192xbf16> to vector<32x192xbf16>
    %cst_16 = arith.constant dense<0.000000e+00> : vector<16x192xf32>
    %35 = tpu.matmul %32, %34, %cst_16 {dimension_numbers = #tpu.dot_dimension_numbers<[1], [0], [0], [1], [0, 0, 1, 1], [], []>} : vector<16x32xbf16>, vector<32x192xbf16>, vector<16x192xf32> -> vector<16x192xf32>
    %c0_17 = arith.constant 0 : index
    %c0_18 = arith.constant 0 : index
    %36 = vector.load %arg3[%c0_17, %c0_18] : memref<16x32xf32, #tpu.memory_space<vmem>>, vector<16x32xf32>
    %37 = arith.truncf %36 : vector<16x32xf32> to vector<16x32xbf16>
    %c0_19 = arith.constant 0 : index
    %c0_20 = arith.constant 0 : index
    %c0_21 = arith.constant 0 : index
    %38 = vector.load %arg7[%c0_19, %c0_20, %c0_21] : memref<1x32x64xbf16, #tpu.memory_space<vmem>>, vector<1x32x64xbf16>
    %39 = vector.shape_cast %38 : vector<1x32x64xbf16> to vector<32x64xbf16>
    %cst_22 = arith.constant dense<0.000000e+00> : vector<16x64xf32>
    %40 = tpu.matmul %37, %39, %cst_22 {dimension_numbers = #tpu.dot_dimension_numbers<[1], [0], [0], [1], [0, 0, 1, 1], [], []>} : vector<16x32xbf16>, vector<32x64xbf16>, vector<16x64xf32> -> vector<16x64xf32>
    %41 = vector.extract_strided_slice %35 {offsets = [0, 0], sizes = [8, 16], strides = [1, 1]} : vector<16x192xf32> to vector<8x16xf32>
    %42 = vector.extract_strided_slice %35 {offsets = [0, 16], sizes = [8, 16], strides = [1, 1]} : vector<16x192xf32> to vector<8x16xf32>
    %43 = vector.extract_strided_slice %35 {offsets = [0, 32], sizes = [8, 16], strides = [1, 1]} : vector<16x192xf32> to vector<8x16xf32>
    %44 = vector.extract_strided_slice %35 {offsets = [0, 48], sizes = [8, 16], strides = [1, 1]} : vector<16x192xf32> to vector<8x16xf32>
    %45 = vector.extract_strided_slice %35 {offsets = [8, 0], sizes = [8, 16], strides = [1, 1]} : vector<16x192xf32> to vector<8x16xf32>
    %46 = vector.extract_strided_slice %35 {offsets = [8, 16], sizes = [8, 16], strides = [1, 1]} : vector<16x192xf32> to vector<8x16xf32>
    %47 = vector.extract_strided_slice %35 {offsets = [8, 32], sizes = [8, 16], strides = [1, 1]} : vector<16x192xf32> to vector<8x16xf32>
    %48 = vector.extract_strided_slice %35 {offsets = [8, 48], sizes = [8, 16], strides = [1, 1]} : vector<16x192xf32> to vector<8x16xf32>
    %49 = vector.shape_cast %41 : vector<8x16xf32> to vector<1x8x16xf32>
    %50 = vector.shape_cast %42 : vector<8x16xf32> to vector<1x8x16xf32>
    %51 = vector.shape_cast %43 : vector<8x16xf32> to vector<1x8x16xf32>
    %52 = vector.shape_cast %44 : vector<8x16xf32> to vector<1x8x16xf32>
    %53 = vector.shape_cast %45 : vector<8x16xf32> to vector<1x8x16xf32>
    %54 = vector.shape_cast %46 : vector<8x16xf32> to vector<1x8x16xf32>
    %55 = vector.shape_cast %47 : vector<8x16xf32> to vector<1x8x16xf32>
    %56 = vector.shape_cast %48 : vector<8x16xf32> to vector<1x8x16xf32>
    %57 = tpu.concatenate %49, %50, %51, %52, %53, %54, %55, %56 in 0 : vector<1x8x16xf32>, vector<1x8x16xf32>, vector<1x8x16xf32>, vector<1x8x16xf32>, vector<1x8x16xf32>, vector<1x8x16xf32>, vector<1x8x16xf32>, vector<1x8x16xf32> -> vector<8x8x16xf32>
    %58 = arith.truncf %57 : vector<8x8x16xf32> to vector<8x8x16xbf16>
    %59 = vector.extract_strided_slice %35 {offsets = [0, 64], sizes = [8, 16], strides = [1, 1]} : vector<16x192xf32> to vector<8x16xf32>
    %60 = vector.extract_strided_slice %35 {offsets = [0, 80], sizes = [8, 16], strides = [1, 1]} : vector<16x192xf32> to vector<8x16xf32>
    %61 = vector.extract_strided_slice %35 {offsets = [0, 96], sizes = [8, 16], strides = [1, 1]} : vector<16x192xf32> to vector<8x16xf32>
    %62 = vector.extract_strided_slice %35 {offsets = [0, 112], sizes = [8, 16], strides = [1, 1]} : vector<16x192xf32> to vector<8x16xf32>
    %63 = vector.extract_strided_slice %35 {offsets = [8, 64], sizes = [8, 16], strides = [1, 1]} : vector<16x192xf32> to vector<8x16xf32>
    %64 = vector.extract_strided_slice %35 {offsets = [8, 80], sizes = [8, 16], strides = [1, 1]} : vector<16x192xf32> to vector<8x16xf32>
    %65 = vector.extract_strided_slice %35 {offsets = [8, 96], sizes = [8, 16], strides = [1, 1]} : vector<16x192xf32> to vector<8x16xf32>
    %66 = vector.extract_strided_slice %35 {offsets = [8, 112], sizes = [8, 16], strides = [1, 1]} : vector<16x192xf32> to vector<8x16xf32>
    %67 = vector.shape_cast %59 : vector<8x16xf32> to vector<1x8x16xf32>
    %68 = vector.shape_cast %60 : vector<8x16xf32> to vector<1x8x16xf32>
    %69 = vector.shape_cast %61 : vector<8x16xf32> to vector<1x8x16xf32>
    %70 = vector.shape_cast %62 : vector<8x16xf32> to vector<1x8x16xf32>
    %71 = vector.shape_cast %63 : vector<8x16xf32> to vector<1x8x16xf32>
    %72 = vector.shape_cast %64 : vector<8x16xf32> to vector<1x8x16xf32>
    %73 = vector.shape_cast %65 : vector<8x16xf32> to vector<1x8x16xf32>
    %74 = vector.shape_cast %66 : vector<8x16xf32> to vector<1x8x16xf32>
    %75 = tpu.concatenate %67, %68, %69, %70, %71, %72, %73, %74 in 0 : vector<1x8x16xf32>, vector<1x8x16xf32>, vector<1x8x16xf32>, vector<1x8x16xf32>, vector<1x8x16xf32>, vector<1x8x16xf32>, vector<1x8x16xf32>, vector<1x8x16xf32> -> vector<8x8x16xf32>
    %76 = arith.truncf %75 : vector<8x8x16xf32> to vector<8x8x16xbf16>
    %77 = vector.extract_strided_slice %35 {offsets = [0, 128], sizes = [8, 16], strides = [1, 1]} : vector<16x192xf32> to vector<8x16xf32>
    %78 = vector.extract_strided_slice %35 {offsets = [0, 144], sizes = [8, 16], strides = [1, 1]} : vector<16x192xf32> to vector<8x16xf32>
    %79 = vector.extract_strided_slice %35 {offsets = [0, 160], sizes = [8, 16], strides = [1, 1]} : vector<16x192xf32> to vector<8x16xf32>
    %80 = vector.extract_strided_slice %35 {offsets = [0, 176], sizes = [8, 16], strides = [1, 1]} : vector<16x192xf32> to vector<8x16xf32>
    %81 = vector.extract_strided_slice %35 {offsets = [8, 128], sizes = [8, 16], strides = [1, 1]} : vector<16x192xf32> to vector<8x16xf32>
    %82 = vector.extract_strided_slice %35 {offsets = [8, 144], sizes = [8, 16], strides = [1, 1]} : vector<16x192xf32> to vector<8x16xf32>
    %83 = vector.extract_strided_slice %35 {offsets = [8, 160], sizes = [8, 16], strides = [1, 1]} : vector<16x192xf32> to vector<8x16xf32>
    %84 = vector.extract_strided_slice %35 {offsets = [8, 176], sizes = [8, 16], strides = [1, 1]} : vector<16x192xf32> to vector<8x16xf32>
    %85 = vector.shape_cast %77 : vector<8x16xf32> to vector<1x8x16xf32>
    %86 = vector.shape_cast %78 : vector<8x16xf32> to vector<1x8x16xf32>
    %87 = vector.shape_cast %79 : vector<8x16xf32> to vector<1x8x16xf32>
    %88 = vector.shape_cast %80 : vector<8x16xf32> to vector<1x8x16xf32>
    %89 = vector.shape_cast %81 : vector<8x16xf32> to vector<1x8x16xf32>
    %90 = vector.shape_cast %82 : vector<8x16xf32> to vector<1x8x16xf32>
    %91 = vector.shape_cast %83 : vector<8x16xf32> to vector<1x8x16xf32>
    %92 = vector.shape_cast %84 : vector<8x16xf32> to vector<1x8x16xf32>
    %93 = tpu.concatenate %85, %86, %87, %88, %89, %90, %91, %92 in 0 : vector<1x8x16xf32>, vector<1x8x16xf32>, vector<1x8x16xf32>, vector<1x8x16xf32>, vector<1x8x16xf32>, vector<1x8x16xf32>, vector<1x8x16xf32>, vector<1x8x16xf32> -> vector<8x8x16xf32>
    %94 = arith.truncf %93 : vector<8x8x16xf32> to vector<8x8x16xbf16>
    %95 = vector.extract_strided_slice %40 {offsets = [0, 0], sizes = [8, 16], strides = [1, 1]} : vector<16x64xf32> to vector<8x16xf32>
    %96 = vector.extract_strided_slice %40 {offsets = [0, 16], sizes = [8, 16], strides = [1, 1]} : vector<16x64xf32> to vector<8x16xf32>
    %97 = vector.extract_strided_slice %40 {offsets = [0, 32], sizes = [8, 16], strides = [1, 1]} : vector<16x64xf32> to vector<8x16xf32>
    %98 = vector.extract_strided_slice %40 {offsets = [0, 48], sizes = [8, 16], strides = [1, 1]} : vector<16x64xf32> to vector<8x16xf32>
    %99 = vector.extract_strided_slice %40 {offsets = [8, 0], sizes = [8, 16], strides = [1, 1]} : vector<16x64xf32> to vector<8x16xf32>
    %100 = vector.extract_strided_slice %40 {offsets = [8, 16], sizes = [8, 16], strides = [1, 1]} : vector<16x64xf32> to vector<8x16xf32>
    %101 = vector.extract_strided_slice %40 {offsets = [8, 32], sizes = [8, 16], strides = [1, 1]} : vector<16x64xf32> to vector<8x16xf32>
    %102 = vector.extract_strided_slice %40 {offsets = [8, 48], sizes = [8, 16], strides = [1, 1]} : vector<16x64xf32> to vector<8x16xf32>
    %103 = vector.shape_cast %95 : vector<8x16xf32> to vector<1x8x16xf32>
    %104 = vector.shape_cast %96 : vector<8x16xf32> to vector<1x8x16xf32>
    %105 = vector.shape_cast %97 : vector<8x16xf32> to vector<1x8x16xf32>
    %106 = vector.shape_cast %98 : vector<8x16xf32> to vector<1x8x16xf32>
    %107 = vector.shape_cast %99 : vector<8x16xf32> to vector<1x8x16xf32>
    %108 = vector.shape_cast %100 : vector<8x16xf32> to vector<1x8x16xf32>
    %109 = vector.shape_cast %101 : vector<8x16xf32> to vector<1x8x16xf32>
    %110 = vector.shape_cast %102 : vector<8x16xf32> to vector<1x8x16xf32>
    %111 = tpu.concatenate %103, %104, %105, %106, %107, %108, %109, %110 in 0 : vector<1x8x16xf32>, vector<1x8x16xf32>, vector<1x8x16xf32>, vector<1x8x16xf32>, vector<1x8x16xf32>, vector<1x8x16xf32>, vector<1x8x16xf32>, vector<1x8x16xf32> -> vector<8x8x16xf32>
    %112 = arith.truncf %111 : vector<8x8x16xf32> to vector<8x8x16xbf16>
    "tpu.trace_start"() <{level = 10 : i32, message = "gnd,gkd->gnk"}> : () -> ()
    %cst_23 = arith.constant dense<0.000000e+00> : vector<8x8x8xf32>
    %113 = tpu.matmul %58, %76, %cst_23 {dimension_numbers = #tpu.dot_dimension_numbers<[2], [2], [1], [1], [0, 0, 0, 1, 1, 1], [0], [0]>} : vector<8x8x16xbf16>, vector<8x8x16xbf16>, vector<8x8x8xf32> -> vector<8x8x8xf32>
    "tpu.trace_stop"() : () -> ()
    %cst_24 = arith.constant 2.500000e-01 : f32
    %114 = vector.broadcast %cst_24 : f32 to vector<8x8x8xf32>
    %115 = arith.mulf %113, %114 : vector<8x8x8xf32>
    "tpu.trace_start"() <{level = 10 : i32, message = "gnd,gmd->gnm"}> : () -> ()
    %cst_25 = arith.constant dense<0.000000e+00> : vector<8x8x8xf32>
    %116 = tpu.matmul %58, %112, %cst_25 {dimension_numbers = #tpu.dot_dimension_numbers<[2], [2], [1], [1], [0, 0, 0, 1, 1, 1], [0], [0]>} : vector<8x8x16xbf16>, vector<8x8x16xbf16>, vector<8x8x8xf32> -> vector<8x8x8xf32>
    "tpu.trace_stop"() : () -> ()
    %cst_26 = arith.constant 2.500000e-01 : f32
    %117 = vector.broadcast %cst_26 : f32 to vector<8x8x8xf32>
    %118 = arith.mulf %116, %117 : vector<8x8x8xf32>
    %cst_27 = arith.constant dense<0xFF800000> : vector<8x8xf32>
    %119 = vector.multi_reduction <maximumf>, %115, %cst_27 [2] : vector<8x8x8xf32> to vector<8x8xf32>
    %120 = vector.shape_cast %119 : vector<8x8xf32> to vector<8x8x1xf32>
    %cst_28 = arith.constant dense<0xFF800000> : vector<8x8xf32>
    %121 = vector.multi_reduction <maximumf>, %118, %cst_28 [2] : vector<8x8x8xf32> to vector<8x8xf32>
    %122 = vector.shape_cast %121 : vector<8x8xf32> to vector<8x8x1xf32>
    %123 = arith.maximumf %120, %122 : vector<8x8x1xf32>
    %124 = vector.broadcast %123 : vector<8x8x1xf32> to vector<8x8x8xf32>
    %125 = arith.subf %115, %124 : vector<8x8x8xf32>
    %126 = math.exp %125 : vector<8x8x8xf32>
    %127 = vector.broadcast %123 : vector<8x8x1xf32> to vector<8x8x8xf32>
    %128 = arith.subf %118, %127 : vector<8x8x8xf32>
    %129 = math.exp %128 : vector<8x8x8xf32>
    %cst_29 = arith.constant dense<0.000000e+00> : vector<8x8xf32>
    %130 = vector.multi_reduction <add>, %126, %cst_29 [2] : vector<8x8x8xf32> to vector<8x8xf32>
    %131 = vector.shape_cast %130 : vector<8x8xf32> to vector<8x8x1xf32>
    %cst_30 = arith.constant dense<0.000000e+00> : vector<8x8xf32>
    %132 = vector.multi_reduction <add>, %129, %cst_30 [2] : vector<8x8x8xf32> to vector<8x8xf32>
    %133 = vector.shape_cast %132 : vector<8x8xf32> to vector<8x8x1xf32>
    %134 = arith.addf %131, %133 : vector<8x8x1xf32>
    %135 = tpu.reciprocal %134 {approx = true} : vector<8x8x1xf32> -> vector<8x8x1xf32>
    %136 = vector.broadcast %135 : vector<8x8x1xf32> to vector<8x8x8xf32>
    %137 = arith.mulf %126, %136 : vector<8x8x8xf32>
    %138 = arith.truncf %137 : vector<8x8x8xf32> to vector<8x8x8xbf16>
    %139 = vector.broadcast %135 : vector<8x8x1xf32> to vector<8x8x8xf32>
    %140 = arith.mulf %129, %139 : vector<8x8x8xf32>
    %141 = arith.truncf %140 : vector<8x8x8xf32> to vector<8x8x8xbf16>
    "tpu.trace_start"() <{level = 10 : i32, message = "gnk,gkd->gnd"}> : () -> ()
    %cst_31 = arith.constant dense<0.000000e+00> : vector<8x8x16xf32>
    %142 = tpu.matmul %138, %94, %cst_31 {dimension_numbers = #tpu.dot_dimension_numbers<[2], [1], [1], [2], [0, 0, 0, 1, 1, 2], [0], [0]>} : vector<8x8x8xbf16>, vector<8x8x16xbf16>, vector<8x8x16xf32> -> vector<8x8x16xf32>
    "tpu.trace_stop"() : () -> ()
    "tpu.trace_start"() <{level = 10 : i32, message = "gnm,gmd->gnd"}> : () -> ()
    %cst_32 = arith.constant dense<0.000000e+00> : vector<8x8x16xf32>
    %143 = tpu.matmul %141, %112, %cst_32 {dimension_numbers = #tpu.dot_dimension_numbers<[2], [1], [1], [2], [0, 0, 0, 1, 1, 2], [0], [0]>} : vector<8x8x8xbf16>, vector<8x8x16xbf16>, vector<8x8x16xf32> -> vector<8x8x16xf32>
    "tpu.trace_stop"() : () -> ()
    %144 = arith.addf %142, %143 : vector<8x8x16xf32>
    %145 = vector.extract_strided_slice %144 {offsets = [0, 0, 0], sizes = [1, 8, 16], strides = [1, 1, 1]} : vector<8x8x16xf32> to vector<1x8x16xf32>
    %146 = vector.shape_cast %145 : vector<1x8x16xf32> to vector<8x16xf32>
    %147 = vector.extract_strided_slice %144 {offsets = [1, 0, 0], sizes = [1, 8, 16], strides = [1, 1, 1]} : vector<8x8x16xf32> to vector<1x8x16xf32>
    %148 = vector.shape_cast %147 : vector<1x8x16xf32> to vector<8x16xf32>
    %149 = vector.extract_strided_slice %144 {offsets = [2, 0, 0], sizes = [1, 8, 16], strides = [1, 1, 1]} : vector<8x8x16xf32> to vector<1x8x16xf32>
    %150 = vector.shape_cast %149 : vector<1x8x16xf32> to vector<8x16xf32>
    %151 = vector.extract_strided_slice %144 {offsets = [3, 0, 0], sizes = [1, 8, 16], strides = [1, 1, 1]} : vector<8x8x16xf32> to vector<1x8x16xf32>
    %152 = vector.shape_cast %151 : vector<1x8x16xf32> to vector<8x16xf32>
    %153 = tpu.concatenate %146, %148, %150, %152 in 1 : vector<8x16xf32>, vector<8x16xf32>, vector<8x16xf32>, vector<8x16xf32> -> vector<8x64xf32>
    %154 = vector.extract_strided_slice %144 {offsets = [4, 0, 0], sizes = [1, 8, 16], strides = [1, 1, 1]} : vector<8x8x16xf32> to vector<1x8x16xf32>
    %155 = vector.shape_cast %154 : vector<1x8x16xf32> to vector<8x16xf32>
    %156 = vector.extract_strided_slice %144 {offsets = [5, 0, 0], sizes = [1, 8, 16], strides = [1, 1, 1]} : vector<8x8x16xf32> to vector<1x8x16xf32>
    %157 = vector.shape_cast %156 : vector<1x8x16xf32> to vector<8x16xf32>
    %158 = vector.extract_strided_slice %144 {offsets = [6, 0, 0], sizes = [1, 8, 16], strides = [1, 1, 1]} : vector<8x8x16xf32> to vector<1x8x16xf32>
    %159 = vector.shape_cast %158 : vector<1x8x16xf32> to vector<8x16xf32>
    %160 = vector.extract_strided_slice %144 {offsets = [7, 0, 0], sizes = [1, 8, 16], strides = [1, 1, 1]} : vector<8x8x16xf32> to vector<1x8x16xf32>
    %161 = vector.shape_cast %160 : vector<1x8x16xf32> to vector<8x16xf32>
    %162 = tpu.concatenate %155, %157, %159, %161 in 1 : vector<8x16xf32>, vector<8x16xf32>, vector<8x16xf32>, vector<8x16xf32> -> vector<8x64xf32>
    %163 = tpu.concatenate %153, %162 in 0 : vector<8x64xf32>, vector<8x64xf32> -> vector<16x64xf32>
    %164 = arith.truncf %163 : vector<16x64xf32> to vector<16x64xbf16>
    %c0_33 = arith.constant 0 : index
    %c0_34 = arith.constant 0 : index
    %c0_35 = arith.constant 0 : index
    %165 = vector.load %arg8[%c0_33, %c0_34, %c0_35] : memref<1x64x32xbf16, #tpu.memory_space<vmem>>, vector<1x64x32xbf16>
    %166 = vector.shape_cast %165 : vector<1x64x32xbf16> to vector<64x32xbf16>
    %cst_36 = arith.constant dense<0.000000e+00> : vector<16x32xf32>
    %167 = tpu.matmul %164, %166, %cst_36 {dimension_numbers = #tpu.dot_dimension_numbers<[1], [0], [0], [1], [0, 0, 1, 1], [], []>} : vector<16x64xbf16>, vector<64x32xbf16>, vector<16x32xf32> -> vector<16x32xf32>
    %c0_37 = arith.constant 0 : index
    %c0_38 = arith.constant 0 : index
    %c0_39 = arith.constant 0 : index
    %168 = vector.load %arg9[%c0_37, %c0_38, %c0_39] : memref<1x1x32xf32, #tpu.memory_space<vmem>>, vector<1x1x32xf32>
    %169 = vector.shape_cast %168 : vector<1x1x32xf32> to vector<1x32xf32>
    %170 = vector.broadcast %169 : vector<1x32xf32> to vector<16x32xf32>
    %171 = arith.addf %167, %170 : vector<16x32xf32>
    %172 = arith.addf %3, %171 : vector<16x32xf32>
    %c0_40 = arith.constant 0 : index
    %c0_41 = arith.constant 0 : index
    %c0_42 = arith.constant 0 : index
    %173 = vector.load %arg10[%c0_40, %c0_41, %c0_42] : memref<1x1x32xf32, #tpu.memory_space<vmem>>, vector<1x1x32xf32>
    %174 = vector.shape_cast %173 : vector<1x1x32xf32> to vector<1x32xf32>
    %c0_43 = arith.constant 0 : index
    %c0_44 = arith.constant 0 : index
    %c0_45 = arith.constant 0 : index
    %175 = vector.load %arg11[%c0_43, %c0_44, %c0_45] : memref<1x1x32xf32, #tpu.memory_space<vmem>>, vector<1x1x32xf32>
    %176 = vector.shape_cast %175 : vector<1x1x32xf32> to vector<1x32xf32>
    %cst_46 = arith.constant dense<0.000000e+00> : vector<16xf32>
    %177 = vector.multi_reduction <add>, %172, %cst_46 [1] : vector<16x32xf32> to vector<16xf32>
    %178 = vector.shape_cast %177 : vector<16xf32> to vector<16x1xf32>
    %cst_47 = arith.constant 3.200000e+01 : f32
    %179 = vector.broadcast %cst_47 : f32 to vector<16x1xf32>
    %180 = arith.divf %178, %179 : vector<16x1xf32>
    %181 = arith.mulf %172, %172 : vector<16x32xf32>
    %cst_48 = arith.constant dense<0.000000e+00> : vector<16xf32>
    %182 = vector.multi_reduction <add>, %181, %cst_48 [1] : vector<16x32xf32> to vector<16xf32>
    %183 = vector.shape_cast %182 : vector<16xf32> to vector<16x1xf32>
    %cst_49 = arith.constant 3.200000e+01 : f32
    %184 = vector.broadcast %cst_49 : f32 to vector<16x1xf32>
    %185 = arith.divf %183, %184 : vector<16x1xf32>
    %186 = arith.mulf %180, %180 : vector<16x1xf32>
    %187 = arith.subf %185, %186 : vector<16x1xf32>
    %cst_50 = arith.constant 0.000000e+00 : f32
    %188 = vector.broadcast %cst_50 : f32 to vector<16x1xf32>
    %189 = arith.maximumf %187, %188 : vector<16x1xf32>
    %190 = vector.broadcast %180 : vector<16x1xf32> to vector<16x32xf32>
    %191 = arith.subf %172, %190 : vector<16x32xf32>
    %cst_51 = arith.constant 9.99999974E-6 : f32
    %192 = vector.broadcast %cst_51 : f32 to vector<16x1xf32>
    %193 = arith.addf %189, %192 : vector<16x1xf32>
    %194 = math.rsqrt %193 : vector<16x1xf32>
    %195 = vector.broadcast %194 : vector<16x1xf32> to vector<16x32xf32>
    %196 = arith.mulf %191, %195 : vector<16x32xf32>
    %197 = vector.broadcast %174 : vector<1x32xf32> to vector<16x32xf32>
    %198 = arith.mulf %196, %197 : vector<16x32xf32>
    %199 = vector.broadcast %176 : vector<1x32xf32> to vector<16x32xf32>
    %200 = arith.addf %198, %199 : vector<16x32xf32>
    %201 = arith.truncf %200 : vector<16x32xf32> to vector<16x32xbf16>
    %c0_52 = arith.constant 0 : index
    %c0_53 = arith.constant 0 : index
    %c0_54 = arith.constant 0 : index
    %202 = vector.load %arg12[%c0_52, %c0_53, %c0_54] : memref<1x32x64xbf16, #tpu.memory_space<vmem>>, vector<1x32x64xbf16>
    %203 = vector.shape_cast %202 : vector<1x32x64xbf16> to vector<32x64xbf16>
    %cst_55 = arith.constant dense<0.000000e+00> : vector<16x64xf32>
    %204 = tpu.matmul %201, %203, %cst_55 {dimension_numbers = #tpu.dot_dimension_numbers<[1], [0], [0], [1], [0, 0, 1, 1], [], []>} : vector<16x32xbf16>, vector<32x64xbf16>, vector<16x64xf32> -> vector<16x64xf32>
    %c0_56 = arith.constant 0 : index
    %c0_57 = arith.constant 0 : index
    %c0_58 = arith.constant 0 : index
    %205 = vector.load %arg13[%c0_56, %c0_57, %c0_58] : memref<1x1x64xf32, #tpu.memory_space<vmem>>, vector<1x1x64xf32>
    %206 = vector.shape_cast %205 : vector<1x1x64xf32> to vector<1x64xf32>
    %207 = vector.broadcast %206 : vector<1x64xf32> to vector<16x64xf32>
    %208 = arith.addf %204, %207 : vector<16x64xf32>
    %cst_59 = arith.constant 5.000000e-01 : f32
    %209 = vector.broadcast %cst_59 : f32 to vector<16x64xf32>
    %210 = arith.mulf %209, %208 : vector<16x64xf32>
    %cst_60 = arith.constant 0.707106769 : f32
    %211 = vector.broadcast %cst_60 : f32 to vector<16x64xf32>
    %212 = arith.mulf %208, %211 : vector<16x64xf32>
    %213 = math.erf %212 : vector<16x64xf32>
    %cst_61 = arith.constant 1.000000e+00 : f32
    %214 = vector.broadcast %cst_61 : f32 to vector<16x64xf32>
    %215 = arith.addf %214, %213 : vector<16x64xf32>
    %216 = arith.mulf %210, %215 : vector<16x64xf32>
    %217 = arith.truncf %216 : vector<16x64xf32> to vector<16x64xbf16>
    %c0_62 = arith.constant 0 : index
    %c0_63 = arith.constant 0 : index
    %c0_64 = arith.constant 0 : index
    %218 = vector.load %arg14[%c0_62, %c0_63, %c0_64] : memref<1x64x32xbf16, #tpu.memory_space<vmem>>, vector<1x64x32xbf16>
    %219 = vector.shape_cast %218 : vector<1x64x32xbf16> to vector<64x32xbf16>
    %cst_65 = arith.constant dense<0.000000e+00> : vector<16x32xf32>
    %220 = tpu.matmul %217, %219, %cst_65 {dimension_numbers = #tpu.dot_dimension_numbers<[1], [0], [0], [1], [0, 0, 1, 1], [], []>} : vector<16x64xbf16>, vector<64x32xbf16>, vector<16x32xf32> -> vector<16x32xf32>
    %c0_66 = arith.constant 0 : index
    %c0_67 = arith.constant 0 : index
    %c0_68 = arith.constant 0 : index
    %221 = vector.load %arg15[%c0_66, %c0_67, %c0_68] : memref<1x1x32xf32, #tpu.memory_space<vmem>>, vector<1x1x32xf32>
    %222 = vector.shape_cast %221 : vector<1x1x32xf32> to vector<1x32xf32>
    %223 = vector.broadcast %222 : vector<1x32xf32> to vector<16x32xf32>
    %224 = arith.addf %220, %223 : vector<16x32xf32>
    %225 = arith.addf %172, %224 : vector<16x32xf32>
    %c0_69 = arith.constant 0 : index
    %c0_70 = arith.constant 0 : index
    %226 = vector.load %arg16[%c0_69, %c0_70] : memref<16x32xf32, #tpu.memory_space<vmem>>, vector<16x32xf32>
    tpu.vector_store %arg16[%c0_69, %c0_70], %225 {strides = array<i32>} : memref<16x32xf32, #tpu.memory_space<vmem>>, vector<16x32xf32>,
    return
  }
  func.func @transform_0(%arg0: i32, %arg1: i32) -> (i32, i32) {
    %c0_i32 = arith.constant 0 : i32
    %c0_i32_0 = arith.constant 0 : i32
    return %arg0, %c0_i32 : i32, i32
  }
  func.func @transform_1(%arg0: i32, %arg1: i32) -> (i32, i32) {
    %c0_i32 = arith.constant 0 : i32
    %c0_i32_0 = arith.constant 0 : i32
    return %arg0, %c0_i32 : i32, i32
  }
  func.func @transform_2(%arg0: i32, %arg1: i32) -> (i32, i32, i32) {
    %c0_i32 = arith.constant 0 : i32
    %c0_i32_0 = arith.constant 0 : i32
    %c0_i32_1 = arith.constant 0 : i32
    return %arg1, %c0_i32, %c0_i32_0 : i32, i32, i32
  }
  func.func @transform_3(%arg0: i32, %arg1: i32) -> (i32, i32, i32) {
    %c0_i32 = arith.constant 0 : i32
    %c0_i32_0 = arith.constant 0 : i32
    %c0_i32_1 = arith.constant 0 : i32
    return %arg1, %c0_i32, %c0_i32_0 : i32, i32, i32
  }
  func.func @transform_4(%arg0: i32, %arg1: i32) -> (i32, i32, i32) {
    %c0_i32 = arith.constant 0 : i32
    %c0_i32_0 = arith.constant 0 : i32
    %c0_i32_1 = arith.constant 0 : i32
    return %arg1, %c0_i32, %c0_i32_0 : i32, i32, i32
  }
  func.func @transform_5(%arg0: i32, %arg1: i32) -> (i32, i32, i32) {
    %c0_i32 = arith.constant 0 : i32
    %c0_i32_0 = arith.constant 0 : i32
    %c0_i32_1 = arith.constant 0 : i32
    return %arg1, %c0_i32, %c0_i32_0 : i32, i32, i32
  }
  func.func @transform_6(%arg0: i32, %arg1: i32) -> (i32, i32, i32) {
    %c0_i32 = arith.constant 0 : i32
    %c0_i32_0 = arith.constant 0 : i32
    %c0_i32_1 = arith.constant 0 : i32
    return %arg1, %c0_i32, %c0_i32_0 : i32, i32, i32
  }
  func.func @transform_7(%arg0: i32, %arg1: i32) -> (i32, i32, i32) {
    %c0_i32 = arith.constant 0 : i32
    %c0_i32_0 = arith.constant 0 : i32
    %c0_i32_1 = arith.constant 0 : i32
    return %arg1, %c0_i32, %c0_i32_0 : i32, i32, i32
  }
  func.func @transform_8(%arg0: i32, %arg1: i32) -> (i32, i32, i32) {
    %c0_i32 = arith.constant 0 : i32
    %c0_i32_0 = arith.constant 0 : i32
    %c0_i32_1 = arith.constant 0 : i32
    return %arg1, %c0_i32, %c0_i32_0 : i32, i32, i32
  }
  func.func @transform_9(%arg0: i32, %arg1: i32) -> (i32, i32, i32) {
    %c0_i32 = arith.constant 0 : i32
    %c0_i32_0 = arith.constant 0 : i32
    %c0_i32_1 = arith.constant 0 : i32
    return %arg1, %c0_i32, %c0_i32_0 : i32, i32, i32
  }
  func.func @transform_10(%arg0: i32, %arg1: i32) -> (i32, i32, i32) {
    %c0_i32 = arith.constant 0 : i32
    %c0_i32_0 = arith.constant 0 : i32
    %c0_i32_1 = arith.constant 0 : i32
    return %arg1, %c0_i32, %c0_i32_0 : i32, i32, i32
  }
  func.func @transform_11(%arg0: i32, %arg1: i32) -> (i32, i32, i32) {
    %c0_i32 = arith.constant 0 : i32
    %c0_i32_0 = arith.constant 0 : i32
    %c0_i32_1 = arith.constant 0 : i32
    return %arg1, %c0_i32, %c0_i32_0 : i32, i32, i32
  }
  func.func @transform_12(%arg0: i32, %arg1: i32) -> (i32, i32, i32) {
    %c0_i32 = arith.constant 0 : i32
    %c0_i32_0 = arith.constant 0 : i32
    %c0_i32_1 = arith.constant 0 : i32
    return %arg1, %c0_i32, %c0_i32_0 : i32, i32, i32
  }
  func.func @transform_13(%arg0: i32, %arg1: i32) -> (i32, i32, i32) {
    %c0_i32 = arith.constant 0 : i32
    %c0_i32_0 = arith.constant 0 : i32
    %c0_i32_1 = arith.constant 0 : i32
    return %arg1, %c0_i32, %c0_i32_0 : i32, i32, i32
  }
  func.func @transform_14(%arg0: i32, %arg1: i32) -> (i32, i32) {
    %c0_i32 = arith.constant 0 : i32
    %c0_i32_0 = arith.constant 0 : i32
    return %arg0, %c0_i32 : i32, i32
  }
}

</mosaic_0001>

<bundles_post_ra>
// kernel: transformer_forward.1
= control target key start
LH: loop header
LB: loop body
LE: loop exit
PB: predicated region body
PF: predicated region fallthrough
CT: control target
= control target key end

     0   :  { %s4813_s0 = inlined_call_operand.vmem [shape: f32[16,32], index: 0, kind: input, shape index: {}]   ;;  %s4814_s1 = inlined_call_operand.vmem [shape: f32[16,32], index: 1, kind: input, shape index: {}]   ;;  %s4815_s2 = inlined_call_operand.vmem [shape: f32[2,1,32], index: 2, kind: input, shape index: {}]   ;;  %s4816_s3 = inlined_call_operand.vmem [shape: f32[2,1,32], index: 3, kind: input, shape index: {}]   ;;  %s4817_s4 = inlined_call_operand.vmem [shape: bf16[2,32,192], index: 4, kind: input, shape index: {}]   ;;  %s4818_s5 = inlined_call_operand.vmem [shape: bf16[2,32,64], index: 5, kind: input, shape index: {}]   ;;  %s4819_s6 = inlined_call_operand.vmem [shape: bf16[2,64,32], index: 6, kind: input, shape index: {}]   ;;  %s4820_s7 = inlined_call_operand.vmem [shape: f32[2,1,32], index: 7, kind: input, shape index: {}]   ;;  %s4821_s8 = inlined_call_operand.vmem [shape: f32[2,1,32], index: 8, kind: input, shape index: {}]   ;;  %s4822_s9 = inlined_call_operand.vmem [shape: f32[2,1,32], index: 9, kind: input, shape index: {}]   ;;  %s4823_s10 = inlined_call_operand.vmem [shape: bf16[2,32,64], index: 10, kind: input, shape index: {}]   ;;  %s4824_s11 = inlined_call_operand.vmem [shape: f32[2,1,64], index: 11, kind: input, shape index: {}]   ;;  %s4825_s12 = inlined_call_operand.vmem [shape: bf16[2,64,32], index: 12, kind: input, shape index: {}]   ;;  %s4826_s13 = inlined_call_operand.hbm [shape: f32[2,1,32], index: 13, kind: input, shape index: {}]   ;;  %s4827_s14 = inlined_call_operand.hbm [shape: f32[16,32], index: 14, kind: output, shape index: {}]  }
   0x1   :  { %4837 = sst [smem:[#allocation16_spill]] %s4814_s1 }
   0x2   :  { %4838 = sst [smem:[#allocation17_spill]] %s4817_s4 }
   0x3   :  { %4839 = sst [smem:[#allocation18_spill]] %s4818_s5 }
   0x4   :  { %4840 = sst [smem:[#allocation19_spill]] %s4819_s6 }
   0x5   :  { %4841 = sst [smem:[#allocation20_spill]] %s4826_s13 }
   0x6   :  { %4842 = sst [smem:[#allocation21_spill]] %s4827_s14 }
   0x7   :  { %19 = vsyncpa [#allocation3], 0 }
   0x8   :  { %21 = vsyncpa [#allocation3 + $0x1], 0 }
   0x9   :  { %22 = vsyncpa [#allocation4], 0  ;;  %s4028_s29 = smov 0   ;;  %s4030_s30 = smov 0  }
   0xa   :  { %s4032_s15 = smov 0   ;;  %s4034_s16 = smov 0  }
   0xb   :  { %s4036_s17 = smov 0   ;;  %s4038_s18 = smov 0  }
   0xc LB: > { %4843 = sst [smem:[#allocation8_spill]] %s3921_s30  ;;  %s4830_s19 = sadd.s32 4294967295, %s3937_s18   ;;  %s3937_s18 = sphi %s4038_s18, %s28_s18   ;;  %s3933_s17 = sphi %s4036_s17, %s4875_s17   ;;  %s3929_s16 = sphi %s4034_s16, %s4874_s16   ;;  %s3925_s15 = sphi %s4032_s15, %s4873_s15   ;;  %s3921_s30 = sphi %s4030_s30, %s4872_s30   ;;  %s3917_s29 = sphi %s4028_s29, %s4871_s29  }
   0xd   : > { %4844 = sst [smem:[#allocation9_spill]] %s3925_s15  ;;  %s37_s20 = sadd.s32 1, %s3933_s17 }
   0xe   : > { %4845 = sst [smem:[#allocation10_spill]] %s3933_s17  ;;  %p38_p0 = scmp.ge.s32.totalorder %s37_s20, 2 }
   0xf   : > { %4846 = sst [smem:[#allocation11_spill]] %s3937_s18  ;;  %s385_s21 = sadd.s32 1, %s3925_s15 }
  0x10   : > { %p392_p1 = scmp.ne.s32.totalorder %s3925_s15, %s3921_s30  ;;  %p393_p2 = scmp.eq.s32.totalorder %s3937_s18, 0 }
  0x11   : > { %s4877_s20 = smov (%p38_p0, %s37_s20), 0  ;;  %p398_p4 = scmp.ne.s32.totalorder %s3921_s30, %s3917_s29 }
  0x12   : > { %4847 = sst [smem:[#allocation12_spill]] %s4877_s20  ;;  %p4064_p3 = por %p393_p2, %p392_p1 }
  0x13   : > { %s382_s23 = ssub.s32 %s3933_s17, %s4877_s20  ;;  %p399_p5 = scmp.eq.s32.totalorder %s4830_s19, 0 }
  0x14   : > { %p383_p6 = scmp.eq.s32.totalorder %s382_s23, 0  ;;  %p3668_p8 = scmp.lt.s32.totalorder %s3937_s18, 2 }
  0x15   : > { %p4073_p7 = por %p399_p5, %p398_p4  ;;  %s542_s26 = sand.u32 1, %s3925_s15  }
  0x16   : > { %s4079_s25 = scalar_select %p383_p6, %s3925_s15, %s385_s21  }
  0x17   : > { %s3232_s27 = sshll.u32 %s3933_s17, 4  ;;  %s4851_s13 = sld [smem:[#allocation20_spill]] }
  0x18   : > { %4850 = sst [smem:[#allocation13_spill]] %s4079_s25  ;;  %s545_s29 = scalar_lea.vmem [#allocation2], %s542_s26 }
  0x19   : > { %s552_s23 = sshll.u32 %s545_s29, 4  ;;  %p4092_p9 = pnand %p3668_p8, %p4064_p3  ;;  %s4088_s23 = int_to_ptr.vmem [resolvable:$true] %s552_s23 }
  0x1a   : > { %s543_s14 = scalar_lea.sflag [#allocation3], %s542_s26 }
  0x1b   : > { %p3829_p13 = pneg %p4092_p9 }
  0x1d   : > { %s4086_s1 = scalar_lea.hbm %s4851_s13, %s3232_s27  ;;  %s3832_s22 = scalar_lea.hbm %s4851_s13, 32 }
  0x1e   : > { %s3827_s21 = scalar_lea.hbm %s4086_s1, 16  ;;  %p3833_p2 = scmp.lt.u32.totalorder %s4086_s1, %s4851_s13 }
  0x1f   : > { %p3828_p12 = scmp.ne.s32.totalorder %s4086_s1, %s3827_s21  ;;  %p3834_p3 = scmp.lt.u32.totalorder %s3832_s22, %s3827_s21 }
  0x20   : > { %p3836_p5 = scmp.lt.u32.totalorder %s3827_s21, %s4086_s1 }
  0x21   : > { %p3830_p0 = pnand %p3829_p13, %p3828_p12  ;;  %p3835_p4 = por %p3834_p3, %p3833_p2 }
  0x23   : > { %p3831_p1 = pneg %p3830_p0  ;;  %p3837_p6 = por %p3836_p5, %p3835_p4 }
  0x25   : > { %p3838_p8 = pnand %p3837_p6, %p3831_p1 }
  0x27   : > { %3841 = shalt.err (!%p3838_p8)
}
  0x28   : > { %s3842_s26 = scalar_lea.vmem %s4088_s23, 16  ;;  %s3939_s27 = smov [#allocation2]  }
  0x29   : > { %p3843_p12 = scmp.ne.s32.totalorder %s4088_s23, %s3842_s26  ;;  %s3847_s28 = sshll.u32 %s3939_s27, 4  ;;  %s3848_s28 = int_to_ptr.vmem [resolvable:$false] %s3847_s28 }
  0x2a   : > { %s3849_s20 = scalar_lea.vmem %s3848_s28, 32  ;;  %p3850_p11 = scmp.lt.s32.totalorder %s4088_s23, %s3848_s28 }
  0x2b   : > { %p3845_p0 = pnand %p3843_p12, %p3829_p13  ;;  %p3851_p2 = scmp.lt.s32.totalorder %s3849_s20, %s3842_s26 }
  0x2d   : > { %p3846_p10 = pneg %p3845_p0  ;;  %p3852_p3 = por %p3851_p2, %p3850_p11 }
  0x2f   : > { %p3853_p4 = pnand %p3852_p3, %p3846_p10 }
  0x31   : > { %3856 = shalt.err (!%p3853_p4)
}
  0x32   : > { %3667 = dma.hbm_to_vmem [thread:$0]  (!%p4092_p9), %s4086_s1, 16, %s4088_s23, %s543_s14  }
  0x33   : > { %p4853_p1 = scmp.lt.s32.totalorder %s3937_s18, 3  ;;  %p4854_p5 = scmp.ge.s32.totalorder %s3937_s18, 1 }
  0x35   : > { %p558_p13 = pnand %p4854_p5, %p4853_p1 }
  0x37   : > { %561 = sbr.rel (%p558_p13) target bundleno = 2540 (0x9ec), region = 76 }
  0x3e   : > { %s563_s21 = sand.u32 1, %s3921_s30  }
  0x3f   : > { %s564_s22 = scalar_lea.sflag [#allocation3], %s563_s21  ;;  %s4128_s29 = scalar_lea.vmem [#allocation2], %s563_s21 }
  0x40   : > { %4855 = sst [smem:[#allocation14_spill]] %s4128_s29 }
  0x41   : > { %3908 = dma.done.wait (%p4073_p7), %s564_s22, 16  }
  0x42   : > { %3910 = vsyncadd (%p4073_p7), %s564_s22, 4294967280  ;;  %p670_p10 = scmp.lt.s32.totalorder %s3929_s16, 1  ;;  %s4856_s4 = sld [smem:[#allocation17_spill]] }
  0x43   : > { %s4857_s5 = sld [smem:[#allocation18_spill]]  ;;  %s4858_s6 = sld [smem:[#allocation19_spill]] }
  0x44   : > { %s4136_s19 = scalar_select %p670_p10, %s3929_s16, 1 }
  0x45   : > { %p3244_p7 = scmp.ne.s32.totalorder %s3929_s16, 0 }
  0x46   : > { %s3309_s28 = sshll.u32 %s4136_s19, 5  ;;  %s3310_s20 = sshll.u32 %s4136_s19, 4  ;;  %v719_v0 = vld [vmem:[%s4813_s0] sm:$0xff] (!%p3244_p7)  ;;  %vm721_vm0 = vcmask (!%p3244_p7), 261120   ;;  %v720_v1 = vld [vmem:[%s4813_s0 + $0x8] sm:$0xff] (!%p3244_p7) }
  0x47   : > { %s693_s24 = scalar_lea.vmem %s4820_s7, %s4136_s19  ;;  %s696_s21 = scalar_lea.vmem %s4821_s8, %s4136_s19  ;;  %722 = vst.msk [vmem:[#allocation5] sm:$0xff] (!%p3244_p7), %vm721_vm0, %v719_v0  ;;  %723 = vst.msk [vmem:[#allocation5 + $0x8] sm:$0xff] (!%p3244_p7), %vm721_vm0, %v720_v1 }
  0x48   : > { %s4151_s13 = scalar_lea.vmem %s4856_s4, %s3309_s28  ;;  %s699_s29 = scalar_lea.vmem %s4822_s9, %s4136_s19 }
  0x49   : > { %s4156_s17 = scalar_lea.vmem %s4857_s5, %s3310_s20  ;;  %s4161_s14 = scalar_lea.vmem %s4858_s6, %s3309_s28 }
  0x4a   : > { %4859 = sst [smem:[#allocation15_spill]] %s4161_s14  ;;  %s4178_s5 = scalar_lea.vmem %s4823_s10, %s3310_s20 }
  0x4b   : > { %s707_s6 = scalar_lea.vmem %s4824_s11, %s4136_s19  ;;  %s4187_s26 = scalar_lea.vmem %s4825_s12, %s3309_s28 }
  0x4c   : > { %718 = sbr.rel (%p3244_p7) target bundleno = 83 (0x53), region = 84 }
  0x53 PF: > { %v724_v2 = vld [vmem:[#allocation5] sm:$0xff]  ;;  %vm728_vm1 = vcmask 261120   ;;  %v725_v3 = vld [vmem:[#allocation5 + $0x8] sm:$0xff]  ;;  %v3750_v12 = vld [vmem:[%s4151_s13 + $0x14] ss:$8 sps:$4 sm:$0xff]   ;;  %v3940_v13 = vmov 0   ;;  %s4861_s23 = scalar_lea.vmem %s4815_s2, %s4136_s19  ;;  %s4862_s30 = scalar_lea.vmem %s4816_s3, %s4136_s19 }
  0x54   : > { %v729_v4 = vsel %vm728_vm1, %v724_v2, 0.0  ;;  %v738_v5 = vmul.f32 %v724_v2, %v724_v2  ;;  %v732_v6 = vsel %vm728_vm1, %v725_v3, 0.0  ;;  %v739_v7 = vmul.f32 %v725_v3, %v725_v3  ;;  %v3747_v10 = vld [vmem:[%s4151_s13 + $0x4] ss:$8 sps:$4 sm:$0xff]   ;;  %v3749_v11 = vld [vmem:[%s4151_s13] ss:$8 sps:$4 sm:$0xff]   ;;  %838 = vmatprep.mubr.bf16.mxu0 %v3940_v13 }
  0x55   : > { %730 = vadd.xlane.f32.xlu0 %v729_v4  ;;  %806 = vmatprep.subr.bf16.mxu0 %v3747_v10  ;;  %v3752_v14 = vld [vmem:[%s4151_s13 + $0x10] ss:$8 sps:$4 sm:$0xff]   ;;  %v3753_v15 = vld [vmem:[%s4156_s17] sm:$0xff]   ;;  %v3941_v16 = vmov 0.0   ;;  %vm3942_vm2 = vmmov 0   ;;  %v3754_v17 = vld [vmem:[%s4156_s17 + $0x8] sm:$0xff]  }
  0x56   : > { %v740_v8 = vsel %vm728_vm1, %v738_v5, 0.0  ;;  %v743_v9 = vsel %vm728_vm1, %v739_v7, 0.0  ;;  %807 = vmatpush1.bf16.msra.mxu0 %v3749_v11  ;;  %3394 = vmatprep.subr.bf16.mxu1 %v3941_v16  ;;  %s4860_s28 = sld [smem:[#allocation16_spill]]  ;;  %v3245_v40 = vld [vmem:[%s4861_s23] ss:$0 sm:$0xff]  ;;  %s3943_s18 = smov 96  }
  0x57   : > { %741 = vadd.xlane.f32.xlu1 %v740_v8  ;;  %808 = vmatprep.subr.bf16.mxu0 %v3750_v12  ;;  %v3246_v45 = vld [vmem:[%s4862_s30] ss:$0 sm:$0xff]  ;;  %s3944_s4 = smov 112   ;;  %s3945_s27 = smov 80   ;;  %vm999_vm3 = vcmask 130048   ;;  %vm1953_vm4 = vcmask 1043456  }
  0x58   : > { %3398 = vmatprep.mubr.msk.bf16.mxu1 %vm3942_vm2, %v3941_v16  ;;  %3395 = vmatpush3.bf16.msra.mxu1 %v3753_v15  ;;  %s3946_s20 = smov 64   ;;  %vm1749_vm5 = vcmask 64512   ;;  %s4863_s16 = sld [smem:[#allocation15_spill]]  ;;  %vm2693_vm6 = vcmask 392192   ;;  %vm2750_vm7 = vcmask 523264  }
  0x59   : > { %733 = vadd.xlane.f32.xlu0 %v732_v6  ;;  %3396 = vmatprep.subr.bf16.mxu1 %v3941_v16  ;;  %s3947_s14 = smov 16   ;;  %s3948_s22 = smov 32  }
  0x5a   : > { %809 = vmatpush1.bf16.msra.mxu0 %v3752_v14  ;;  %s3949_s1 = smov 48   ;;  %s4864_s25 = sld [smem:[#allocation14_spill]] }
  0x5b   : > { %744 = vadd.xlane.f32.xlu1 %v743_v9  ;;  %3402 = vmatprep.subr.bf16.mxu0 %v3941_v16 }
  0x5c   : > { %v849_v18 = vld [vmem:[%s4860_s28] sm:$0xff]  ;;  %v850_v19 = vld [vmem:[%s4860_s28 + $0x8] sm:$0xff]  ;;  %3397 = vmatpush3.bf16.msra.mxu1 %v3754_v17 }
  0x5d   : > { %v851_v20 = vpack.c.bf16 %v850_v19, %v849_v18  ;;  %3408 = vmatprep.subr.bf16.mxu1 %v3941_v16 }
  0x5f   : > { %3399 = vmatmul.mubr.msk.bf16.vlgmr.msra.gmra.mrb[0].mxu1 %vm728_vm1, %v851_v20 }
  0x60   : > { %3410 = vmatprep.mubr.msk.bf16.mxu1 %vm3942_vm2, %v3941_v16 }
  0xe2   : > { %v731_v21 = vpop.xlane.xlu0 %730 }
  0xe3   : > { %v736_v22 = vmul.f32 0.03125, %v731_v21 }
  0xe4   : > { %v742_v23 = vpop.xlane.xlu1 %741 }
  0xe5   : > { %v748_v24 = vmul.f32 %v736_v22, %v736_v22  ;;  %v746_v25 = vmul.f32 0.03125, %v742_v23  ;;  %v754_v37 = vsub.f32 %v724_v2, %v736_v22 }
  0xe6   : > { %v734_v26 = vpop.xlane.xlu0 %733 }
  0xe7   : > { %v750_v27 = vsub.f32 %v746_v25, %v748_v24  ;;  %v737_v28 = vmul.f32 0.03125, %v734_v26 }
  0xe8   : > { %v745_v29 = vpop.xlane.xlu1 %744 }
  0xe9   : > { %v752_v30 = vmax.f32 %v750_v27, 0.0  ;;  %v749_v31 = vmul.f32 %v737_v28, %v737_v28  ;;  %v747_v32 = vmul.f32 0.03125, %v745_v29  ;;  %v755_v41 = vsub.f32 %v725_v3, %v737_v28 }
  0xeb   : > { %v756_v33 = vadd.f32 1e-05, %v752_v30  ;;  %v751_v34 = vsub.f32 %v747_v32, %v749_v31 }
  0xed   : > { %3765 = vrsqrt.f32 %v756_v33  ;;  %v753_v35 = vmax.f32 %v751_v34, 0.0 }
  0xef   : > { %v757_v36 = vadd.f32 1e-05, %v753_v35 }
  0xf1   : > { %3767 = vrsqrt.f32 %v757_v36 }
  0xf7   : > { %v3766_v38 = vpop.eup %3765 }
  0xf8   : > { %v760_v39 = vmul.f32 %v3766_v38, %v754_v37 }
  0xfa   : > { %v768_v44 = vmul.f32 %v3245_v40, %v760_v39 }
  0xfb   : > { %v3768_v42 = vpop.eup %3767 }
  0xfc   : > { %v761_v43 = vmul.f32 %v3768_v42, %v755_v41  ;;  %v776_v47 = vadd.f32 %v3246_v45, %v768_v44 }
  0xfe   : > { %v769_v46 = vmul.f32 %v3245_v40, %v761_v43 }
 0x100   : > { %v777_v48 = vadd.f32 %v3246_v45, %v769_v46 }
 0x102   : > { %v778_v49 = vpack.c.bf16 %v777_v48, %v776_v47 }
 0x104   : > { %3251 = vmatmul.mubr.msk.bf16.vlgmr.msra.gmra.mrb[0].mxu0 %vm728_vm1, %v778_v49 }
 0x105   : > { %3404 = vmatprep.mubr.msk.bf16.mxu0 %vm3942_vm2, %v3941_v16 }
 0x132   : > { %v4240_v54 = vpop.f32.mrb[0].mxu1 }
 0x133   : > { %v3400_v55 = vpop.f32.mrb[1].mxu1  ;;  %v988_v23 = vpack.c.bf16 %v4240_v54, %v4240_v54 }
 0x134   : > { %v4244_v56 = vpop.f32.mrb[2].mxu1 }
 0x135   : > { %v3401_v58 = vpop.f32.mrb[3].mxu1  ;;  %v1398_v26 = vsel %vm999_vm3, %v988_v23, 0  ;;  %v4351_v35 = vpack.c.bf16 %v4244_v56, %v4244_v56  ;;  %v1954_v47 = vsel %vm1953_vm4, %v988_v23, 0 }
 0x137   : > { %v1570_v37 = vsel %vm999_vm3, %v4351_v35, 0 }
 0x1d7   : > { %v840_v50 = vpop.f32.mrb[0].mxu0 }
 0x1d8   : > { %916 = vrot.lane.b32.xlu1 %v840_v50, %s3943_s18  ;;  %913 = vrot.lane.b32.xlu0 %v840_v50, %s3944_s4  ;;  %v4236_v51 = vpop.f32.mrb[1].mxu0  ;;  %v4246_v57 = vpack.c.bf16 %v840_v50, %v840_v50 }
 0x1d9   : > { %v844_v52 = vpop.f32.mrb[2].mxu0 }
 0x1da   : > { %v4238_v53 = vpop.f32.mrb[3].mxu0  ;;  %v4259_v2 = vpack.c.bf16 %v844_v52, %v844_v52 }
 0x1dc   : > { %919 = vrot.lane.b32.xlu1 %v840_v50, %s3945_s27  ;;  %926 = vrot.lane.b32.xlu0 %v844_v52, %s3943_s18 }
 0x1e0   : > { %997 = vrot.lane.b32.xlu0 %v4246_v57, %s3946_s20  ;;  %923 = vrot.lane.b32.xlu1 %v844_v52, %s3944_s4 }
 0x1e4   : > { %929 = vrot.lane.b32.xlu1 %v844_v52, %s3945_s27 }
 0x24a   : > { %v917_v59 = vpop.permute.xlu1 %916  ;;  %v914_v60 = vpop.permute.xlu0 %913 }
 0x24b   : > { %v4251_v61 = vpack.c.bf16 %v917_v59, %v917_v59  ;;  %v4253_v62 = vpack.c.bf16 %v914_v60, %v914_v60 }
 0x24d   : > { %1096 = vrot.lane.b32.xlu0 %v4251_v61, %s3946_s20  ;;  %1047 = vrot.lane.b32.xlu1 %v4253_v62, %s3946_s20 }
 0x24e   : > { %v920_v63 = vpop.permute.xlu1 %919  ;;  %v927_v0 = vpop.permute.xlu0 %926 }
 0x24f   : > { %v4257_v1 = vpack.c.bf16 %v920_v63, %v920_v63  ;;  %v4263_v5 = vpack.c.bf16 %v927_v0, %v927_v0 }
 0x251   : > { %1145 = vrot.lane.b32.xlu1 %v4257_v1, %s3946_s20  ;;  %1194 = vrot.lane.b32.xlu0 %v4259_v2, %s3946_s20 }
 0x252   : > { %v998_v3 = vpop.permute.xlu0 %997  ;;  %v924_v4 = vpop.permute.xlu1 %923 }
 0x253   : > { %v1004_v6 = vsel %vm999_vm3, %v998_v3, 0  ;;  %v4266_v7 = vpack.c.bf16 %v924_v4, %v924_v4 }
 0x254   : > { %3403 = vmatpush3.bf16.xpose.msra.mxu0 %v1004_v6 }
 0x255   : > { %1243 = vrot.lane.b32.xlu1 %v4266_v7, %s3946_s20  ;;  %1292 = vrot.lane.b32.xlu0 %v4263_v5, %s3946_s20 }
 0x256   : > { %v930_v8 = vpop.permute.xlu1 %929  ;;  %3414 = vmatprep.subr.bf16.mxu0 %v3941_v16 }
 0x257   : > { %v4271_v9 = vpack.c.bf16 %v930_v8, %v930_v8 }
 0x259   : > { %1341 = vrot.lane.b32.xlu1 %v4271_v9, %s3946_s20  ;;  %969 = vrot.lane.b32.xlu0 %v4240_v54, %s3944_s4 }
 0x25b   : > { %3405 = vmatmul.mubr.msk.bf16.vlgmr.msra.gmra.mrb[4].mxu0 %vm999_vm3, %v4246_v57 }
 0x25c   : > { %3416 = vmatprep.mubr.msk.bf16.mxu0 %vm3942_vm2, %v3941_v16 }
 0x25d   : > { %972 = vrot.lane.b32.xlu1 %v4240_v54, %s3943_s18  ;;  %975 = vrot.lane.b32.xlu0 %v4240_v54, %s3945_s27 }
 0x261   : > { %979 = vrot.lane.b32.xlu1 %v4244_v56, %s3944_s4  ;;  %982 = vrot.lane.b32.xlu0 %v4244_v56, %s3943_s18 }
 0x265   : > { %985 = vrot.lane.b32.xlu1 %v4244_v56, %s3945_s27 }
 0x2bf   : > { %v1097_v10 = vpop.permute.xlu0 %1096  ;;  %v1048_v11 = vpop.permute.xlu1 %1047 }
 0x2c0   : > { %v1102_v12 = vsel %vm999_vm3, %v1097_v10, 0  ;;  %v1053_v13 = vsel %vm999_vm3, %v1048_v11, 0 }
 0x2c1   : > { %3409 = vmatpush3.bf16.xpose.msra.mxu1 %v1053_v13  ;;  %3415 = vmatpush3.bf16.xpose.msra.mxu0 %v1102_v12 }
 0x2c2   : > { %3420 = vmatprep.subr.bf16.mxu1 %v3941_v16  ;;  %3426 = vmatprep.subr.bf16.mxu0 %v3941_v16 }
 0x2c3   : > { %v1146_v14 = vpop.permute.xlu1 %1145  ;;  %v1195_v15 = vpop.permute.xlu0 %1194 }
 0x2c4   : > { %v1151_v17 = vsel %vm999_vm3, %v1146_v14, 0  ;;  %v1200_v18 = vsel %vm999_vm3, %v1195_v15, 0 }
 0x2c7   : > { %v1244_v19 = vpop.permute.xlu1 %1243  ;;  %v1293_v20 = vpop.permute.xlu0 %1292 }
 0x2c8   : > { %3411 = vmatmul.mubr.msk.bf16.vlgmr.msra.gmra.mrb[4].mxu1 %vm999_vm3, %v4253_v62  ;;  %3417 = vmatmul.mubr.msk.bf16.vlgmr.msra.gmra.mrb[8].mxu0 %vm999_vm3, %v4251_v61  ;;  %v1249_v21 = vsel %vm999_vm3, %v1244_v19, 0  ;;  %v1298_v22 = vsel %vm999_vm3, %v1293_v20, 0 }
 0x2c9   : > { %3421 = vmatpush3.bf16.xpose.msra.mxu1 %v1151_v17  ;;  %3427 = vmatpush3.bf16.xpose.msra.mxu0 %v1200_v18 }
 0x2ca   : > { %3422 = vmatprep.mubr.msk.bf16.mxu1 %vm3942_vm2, %v3941_v16  ;;  %3428 = vmatprep.mubr.msk.bf16.mxu0 %vm3942_vm2, %v3941_v16 }
 0x2cb   : > { %3432 = vmatprep.subr.bf16.mxu1 %v3941_v16  ;;  %3438 = vmatprep.subr.bf16.mxu0 %v3941_v16  ;;  %v1342_v24 = vpop.permute.xlu1 %1341  ;;  %v970_v28 = vpop.permute.xlu0 %969 }
 0x2cc   : > { %v1347_v25 = vsel %vm999_vm3, %v1342_v24, 0  ;;  %v989_v30 = vpack.c.bf16 %v970_v28, %v970_v28 }
 0x2ce   : > { %v1441_v32 = vsel %vm999_vm3, %v989_v30, 0  ;;  %v1999_v48 = vsel %vm1953_vm4, %v989_v30, 0 }
 0x2cf   : > { %v973_v27 = vpop.permute.xlu1 %972  ;;  %v976_v33 = vpop.permute.xlu0 %975 }
 0x2d0   : > { %3423 = vmatmul.mubr.msk.bf16.vlgmr.msra.gmra.mrb[8].mxu1 %vm999_vm3, %v4257_v1  ;;  %3429 = vmatmul.mubr.msk.bf16.vlgmr.msra.gmra.mrb[12].mxu0 %vm999_vm3, %v4259_v2  ;;  %v4326_v29 = vpack.c.bf16 %v973_v27, %v973_v27  ;;  %v4347_v34 = vpack.c.bf16 %v976_v33, %v976_v33 }
 0x2d1   : > { %3433 = vmatpush3.bf16.xpose.msra.mxu1 %v1249_v21  ;;  %3439 = vmatpush3.bf16.xpose.msra.mxu0 %v1298_v22 }
 0x2d2   : > { %3434 = vmatprep.mubr.msk.bf16.mxu1 %vm3942_vm2, %v3941_v16  ;;  %3440 = vmatprep.mubr.msk.bf16.mxu0 %vm3942_vm2, %v3941_v16  ;;  %v1484_v31 = vsel %vm999_vm3, %v4326_v29, 0  ;;  %v1527_v36 = vsel %vm999_vm3, %v4347_v34, 0 }
 0x2d3   : > { %3444 = vmatprep.subr.bf16.mxu1 %v3941_v16  ;;  %3450 = vmatprep.subr.bf16.mxu0 %v3941_v16  ;;  %v983_v38 = vpop.permute.xlu0 %982  ;;  %v980_v39 = vpop.permute.xlu1 %979 }
 0x2d4   : > { %v4367_v40 = vpack.c.bf16 %v980_v39, %v980_v39  ;;  %v4369_v41 = vpack.c.bf16 %v983_v38, %v983_v38 }
 0x2d6   : > { %v1613_v42 = vsel %vm999_vm3, %v4367_v40, 0  ;;  %v1656_v43 = vsel %vm999_vm3, %v4369_v41, 0 }
 0x2d7   : > { %v986_v44 = vpop.permute.xlu1 %985 }
 0x2d8   : > { %3435 = vmatmul.mubr.msk.bf16.vlgmr.msra.gmra.mrb[12].mxu1 %vm999_vm3, %v4266_v7  ;;  %3441 = vmatmul.mubr.msk.bf16.vlgmr.msra.gmra.mrb[16].mxu0 %vm999_vm3, %v4263_v5  ;;  %v4385_v45 = vpack.c.bf16 %v986_v44, %v986_v44 }
 0x2d9   : > { %3445 = vmatpush3.bf16.xpose.msra.mxu1 %v1347_v25  ;;  %3451 = vmatpush3.bf16.xpose.msra.mxu0 %v1398_v26 }
 0x2da   : > { %3446 = vmatprep.mubr.msk.bf16.mxu1 %vm3942_vm2, %v3941_v16  ;;  %3452 = vmatprep.mubr.msk.bf16.mxu0 %vm3942_vm2, %v3941_v16  ;;  %v1699_v46 = vsel %vm999_vm3, %v4385_v45, 0 }
 0x2db   : > { %3456 = vmatprep.subr.bf16.mxu1 %v3941_v16  ;;  %3462 = vmatprep.subr.bf16.mxu0 %v3941_v16 }
 0x2e0   : > { %3447 = vmatmul.mubr.msk.bf16.vlgmr.msra.gmra.mrb[16].mxu1 %vm999_vm3, %v4271_v9  ;;  %3453 = vmatmul.mubr.msk.bf16.vlgmr.msra.gmra.mrb[20].mxu0 %vm999_vm3, %v4246_v57 }
 0x2e1   : > { %3457 = vmatpush3.bf16.xpose.msra.mxu1 %v1441_v32  ;;  %3463 = vmatpush3.bf16.xpose.msra.mxu0 %v1484_v31 }
 0x2e2   : > { %3458 = vmatprep.mubr.msk.bf16.mxu1 %vm3942_vm2, %v3941_v16  ;;  %3464 = vmatprep.mubr.msk.bf16.mxu0 %vm3942_vm2, %v3941_v16 }
 0x2e3   : > { %3468 = vmatprep.subr.bf16.mxu1 %v3941_v16  ;;  %3474 = vmatprep.subr.bf16.mxu0 %v3941_v16 }
 0x2e8   : > { %3459 = vmatmul.mubr.msk.bf16.vlgmr.msra.gmra.mrb[20].mxu1 %vm999_vm3, %v4253_v62  ;;  %3465 = vmatmul.mubr.msk.bf16.vlgmr.msra.gmra.mrb[24].mxu0 %vm999_vm3, %v4251_v61 }
 0x2e9   : > { %3469 = vmatpush3.bf16.xpose.msra.mxu1 %v1527_v36  ;;  %3475 = vmatpush3.bf16.xpose.msra.mxu0 %v1570_v37 }
 0x2ea   : > { %3470 = vmatprep.mubr.msk.bf16.mxu1 %vm3942_vm2, %v3941_v16  ;;  %3476 = vmatprep.mubr.msk.bf16.mxu0 %vm3942_vm2, %v3941_v16 }
 0x2eb   : > { %3480 = vmatprep.subr.bf16.mxu1 %v3941_v16  ;;  %3486 = vmatprep.subr.bf16.mxu0 %v3941_v16 }
 0x2f0   : > { %3471 = vmatmul.mubr.msk.bf16.vlgmr.msra.gmra.mrb[24].mxu1 %vm999_vm3, %v4257_v1  ;;  %3477 = vmatmul.mubr.msk.bf16.vlgmr.msra.gmra.mrb[28].mxu0 %vm999_vm3, %v4259_v2 }
 0x2f1   : > { %3481 = vmatpush3.bf16.xpose.msra.mxu1 %v1613_v42  ;;  %3487 = vmatpush3.bf16.xpose.msra.mxu0 %v1656_v43 }
 0x2f2   : > { %3482 = vmatprep.mubr.msk.bf16.mxu1 %vm3942_vm2, %v3941_v16  ;;  %3488 = vmatprep.mubr.msk.bf16.mxu0 %vm3942_vm2, %v3941_v16 }
 0x2f3   : > { %3492 = vmatprep.subr.bf16.mxu1 %v3941_v16  ;;  %3498 = vmatprep.subr.bf16.mxu0 %v3941_v16 }
 0x2f8   : > { %3483 = vmatmul.mubr.msk.bf16.vlgmr.msra.gmra.mrb[28].mxu1 %vm999_vm3, %v4266_v7  ;;  %3489 = vmatmul.mubr.msk.bf16.vlgmr.msra.gmra.mrb[32].mxu0 %vm999_vm3, %v4263_v5 }
 0x2f9   : > { %3493 = vmatpush3.bf16.xpose.msra.mxu1 %v1699_v46  ;;  %3499 = vmatpush3.bf16.msra.mxu0 %v1954_v47 }
 0x2fa   : > { %3494 = vmatprep.mubr.msk.bf16.mxu1 %vm3942_vm2, %v3941_v16  ;;  %3504 = vmatprep.subr.bf16.mxu1 %v3941_v16 }
 0x2fb   : > { %3500 = vmatprep.mubr.msk.bf16.mxu0 %vm3942_vm2, %v3941_v16  ;;  %3510 = vmatprep.subr.bf16.mxu0 %v3941_v16 }
 0x300   : > { %3495 = vmatmul.mubr.msk.bf16.vlgmr.msra.gmra.mrb[32].mxu1 %vm999_vm3, %v4271_v9 }
 0x301   : > { %3505 = vmatpush3.bf16.msra.mxu1 %v1999_v48  ;;  %3506 = vmatprep.mubr.msk.bf16.mxu1 %vm3942_vm2, %v3941_v16 }
 0x302   : > { %3516 = vmatprep.subr.bf16.mxu1 %v3941_v16 }
 0x32e   : > { %v1040_v49 = vpop.f32.mrb[4].mxu0 }
 0x32f   : > { %v4406_v50 = vmul.f32 0.25, %v1040_v49  ;;  %v3406_v52 = vpop.f32.mrb[5].mxu0 }
 0x330   : > { %v1043_v54 = vpop.f32.mrb[6].mxu0 }
 0x331   : > { %v3407_v55 = vpop.f32.mrb[7].mxu0  ;;  %v1750_v56 = vsel %vm1749_vm5, %v4406_v50, -inf }
 0x332   : > { %1751 = vmax.xlane.f32.xlu0 %v1750_v56 }
 0x39b   : > { %v1089_v57 = vpop.f32.mrb[4].mxu1  ;;  %v1138_v58 = vpop.f32.mrb[8].mxu0 }
 0x39c   : > { %v4410_v59 = vmul.f32 0.25, %v1089_v57  ;;  %v3412_v60 = vpop.f32.mrb[5].mxu1  ;;  %v3418_v61 = vpop.f32.mrb[9].mxu0  ;;  %v4424_v43 = vmul.f32 0.25, %v1138_v58 }
 0x39d   : > { %v1092_v62 = vpop.f32.mrb[6].mxu1  ;;  %v1141_v63 = vpop.f32.mrb[10].mxu0 }
 0x39e   : > { %v3413_v0 = vpop.f32.mrb[7].mxu1  ;;  %v3419_v1 = vpop.f32.mrb[11].mxu0  ;;  %v1753_v2 = vsel %vm1749_vm5, %v4410_v59, -inf  ;;  %v1756_v52 = vsel %vm1749_vm5, %v4424_v43, -inf }
 0x39f   : > { %1754 = vmax.xlane.f32.xlu0 %v1753_v2 }
 0x3a3   : > { %v1187_v3 = vpop.f32.mrb[8].mxu1  ;;  %v1236_v4 = vpop.f32.mrb[12].mxu0 }
 0x3a4   : > { %v3424_v5 = vpop.f32.mrb[9].mxu1  ;;  %v3430_v6 = vpop.f32.mrb[13].mxu0  ;;  %v4430_v49 = vmul.f32 0.25, %v1187_v3  ;;  %v4436_v62 = vmul.f32 0.25, %v1236_v4 }
 0x3a5   : > { %v1190_v7 = vpop.f32.mrb[10].mxu1  ;;  %v1239_v8 = vpop.f32.mrb[14].mxu0 }
 0x3a6   : > { %v3425_v9 = vpop.f32.mrb[11].mxu1  ;;  %v3431_v10 = vpop.f32.mrb[15].mxu0  ;;  %v1759_v2 = vsel %vm1749_vm5, %v4430_v49, -inf  ;;  %v1762_v6 = vsel %vm1749_vm5, %v4436_v62, -inf }
 0x3ab   : > { %v1285_v11 = vpop.f32.mrb[12].mxu1  ;;  %v1334_v12 = vpop.f32.mrb[16].mxu0 }
 0x3ac   : > { %v3436_v13 = vpop.f32.mrb[13].mxu1  ;;  %v3442_v14 = vpop.f32.mrb[17].mxu0  ;;  %v4444_v5 = vmul.f32 0.25, %v1285_v11 }
 0x3ad   : > { %v1288_v15 = vpop.f32.mrb[14].mxu1  ;;  %v1337_v17 = vpop.f32.mrb[18].mxu0 }
 0x3ae   : > { %v3437_v18 = vpop.f32.mrb[15].mxu1  ;;  %v3443_v19 = vpop.f32.mrb[19].mxu0  ;;  %v4452_v17 = vmul.f32 0.25, %v1334_v12 }
 0x3b3   : > { %v4414_v20 = vpop.f32.mrb[16].mxu1  ;;  %v1434_v21 = vpop.f32.mrb[20].mxu0 }
 0x3b4   : > { %v4416_v22 = vmul.f32 0.25, %v1434_v21  ;;  %v3448_v23 = vpop.f32.mrb[17].mxu1  ;;  %v3454_v24 = vpop.f32.mrb[21].mxu0  ;;  %v1765_v21 = vsel %vm1749_vm5, %v4444_v5, -inf }
 0x3b5   : > { %v1386_v25 = vpop.f32.mrb[18].mxu1  ;;  %v1437_v26 = vpop.f32.mrb[22].mxu0  ;;  %v4461_v24 = vmul.f32 0.25, %v4414_v20 }
 0x3b6   : > { %v3449_v27 = vpop.f32.mrb[19].mxu1  ;;  %v3455_v28 = vpop.f32.mrb[23].mxu0  ;;  %v1774_v30 = vsel %vm1749_vm5, %v4416_v22, -inf  ;;  %v1768_v25 = vsel %vm1749_vm5, %v4452_v17, -inf }
 0x3b7   : > { %1775 = vmax.xlane.f32.xlu1 %v1774_v30 }
 0x3bb   : > { %v1477_v31 = vpop.f32.mrb[20].mxu1  ;;  %v1520_v32 = vpop.f32.mrb[24].mxu0 }
 0x3bc   : > { %v4420_v33 = vmul.f32 0.25, %v1477_v31  ;;  %v4422_v36 = vmul.f32 0.25, %v1520_v32  ;;  %v3460_v37 = vpop.f32.mrb[21].mxu1  ;;  %v3466_v38 = vpop.f32.mrb[25].mxu0  ;;  %v1771_v32 = vsel %vm1749_vm5, %v4461_v24, -inf }
 0x3bd   : > { %v1480_v39 = vpop.f32.mrb[22].mxu1  ;;  %v1523_v42 = vpop.f32.mrb[26].mxu0 }
 0x3be   : > { %v3461_v44 = vpop.f32.mrb[23].mxu1  ;;  %v3467_v46 = vpop.f32.mrb[27].mxu0  ;;  %v1777_v47 = vsel %vm1749_vm5, %v4420_v33, -inf  ;;  %v1780_v48 = vsel %vm1749_vm5, %v4422_v36, -inf }
 0x3bf   : > { %1778 = vmax.xlane.f32.xlu0 %v1777_v47  ;;  %1781 = vmax.xlane.f32.xlu1 %v1780_v48  ;;  %v1752_v37 = vpop.xlane.xlu0 %1751 }
 0x3c3   : > { %v1563_v54 = vpop.f32.mrb[24].mxu1  ;;  %1757 = vmax.xlane.f32.xlu0 %v1756_v52  ;;  %v1606_v55 = vpop.f32.mrb[28].mxu0 }
 0x3c4   : > { %v4434_v56 = vmul.f32 0.25, %v1563_v54  ;;  %v3472_v57 = vpop.f32.mrb[25].mxu1  ;;  %v3478_v58 = vpop.f32.mrb[29].mxu0  ;;  %v4438_v63 = vmul.f32 0.25, %v1606_v55 }
 0x3c5   : > { %v1566_v60 = vpop.f32.mrb[26].mxu1  ;;  %v1609_v61 = vpop.f32.mrb[30].mxu0 }
 0x3c6   : > { %v3473_v0 = vpop.f32.mrb[27].mxu1  ;;  %v3479_v1 = vpop.f32.mrb[31].mxu0  ;;  %v1783_v3 = vsel %vm1749_vm5, %v4434_v56, -inf  ;;  %v1786_v4 = vsel %vm1749_vm5, %v4438_v63, -inf }
 0x3c7   : > { %1760 = vmax.xlane.f32.xlu0 %v1759_v2  ;;  %1784 = vmax.xlane.f32.xlu1 %v1783_v3 }
 0x3cb   : > { %v1649_v7 = vpop.f32.mrb[28].mxu1  ;;  %1763 = vmax.xlane.f32.xlu0 %v1762_v6  ;;  %1787 = vmax.xlane.f32.xlu1 %v1786_v4  ;;  %v1692_v8 = vpop.f32.mrb[32].mxu0 }
 0x3cc   : > { %v4450_v9 = vmul.f32 0.25, %v1649_v7  ;;  %v3484_v10 = vpop.f32.mrb[29].mxu1  ;;  %v3490_v13 = vpop.f32.mrb[33].mxu0  ;;  %v4454_v11 = vmul.f32 0.25, %v1692_v8 }
 0x3cd   : > { %v1652_v14 = vpop.f32.mrb[30].mxu1  ;;  %v1695_v15 = vpop.f32.mrb[34].mxu0 }
 0x3ce   : > { %v3485_v18 = vpop.f32.mrb[31].mxu1  ;;  %v3491_v19 = vpop.f32.mrb[35].mxu0  ;;  %v1789_v23 = vsel %vm1749_vm5, %v4450_v9, -inf  ;;  %v1792_v12 = vsel %vm1749_vm5, %v4454_v11, -inf }
 0x3cf   : > { %1766 = vmax.xlane.f32.xlu0 %v1765_v21  ;;  %1790 = vmax.xlane.f32.xlu1 %v1789_v23 }
 0x3d3   : > { %v1735_v26 = vpop.f32.mrb[32].mxu1  ;;  %1769 = vmax.xlane.f32.xlu0 %v1768_v25  ;;  %1793 = vmax.xlane.f32.xlu1 %v1792_v12 }
 0x3d4   : > { %v4467_v27 = vmul.f32 0.25, %v1735_v26  ;;  %v3496_v28 = vpop.f32.mrb[33].mxu1 }
 0x3d5   : > { %v1738_v30 = vpop.f32.mrb[34].mxu1 }
 0x3d6   : > { %v3497_v31 = vpop.f32.mrb[35].mxu1  ;;  %v1795_v20 = vsel %vm1749_vm5, %v4467_v27, -inf }
 0x3d7   : > { %1772 = vmax.xlane.f32.xlu0 %v1771_v32  ;;  %1796 = vmax.xlane.f32.xlu1 %v1795_v20 }
 0x42c   : > { %v1755_v46 = vpop.xlane.xlu0 %1754 }
 0x444   : > { %v1776_v38 = vpop.xlane.xlu1 %1775 }
 0x445   : > { %v1798_v39 = vmax.f32 %v1752_v37, %v1776_v38 }
 0x447   : > { %v1806_v42 = vsub.f32 %v4406_v50, %v1798_v39  ;;  %v1830_v44 = vsub.f32 %v4416_v22, %v1798_v39 }
 0x449   : > { %v1814_v47 = vmul.f32 1.442695, %v1806_v42  ;;  %v1838_v48 = vmul.f32 1.442695, %v1830_v44 }
 0x44b   : > { %3769 = vpow2.f32 %v1814_v47 }
 0x44c   : > { %3771 = vpow2.f32 %v1838_v48  ;;  %v1779_v52 = vpop.xlane.xlu0 %1778  ;;  %v1782_v58 = vpop.xlane.xlu1 %1781 }
 0x44d   : > { %v1799_v54 = vmax.f32 %v1755_v46, %v1779_v52 }
 0x44f   : > { %v1807_v55 = vsub.f32 %v4410_v59, %v1799_v54  ;;  %v1831_v57 = vsub.f32 %v4420_v33, %v1799_v54 }
 0x450   : > { %v1758_v60 = vpop.xlane.xlu0 %1757 }
 0x451   : > { %v1816_v61 = vmul.f32 1.442695, %v1807_v55  ;;  %v1840_v0 = vmul.f32 1.442695, %v1831_v57  ;;  %v1800_v1 = vmax.f32 %v1758_v60, %v1782_v58 }
 0x453   : > { %3773 = vpow2.f32 %v1816_v61  ;;  %v1808_v50 = vsub.f32 %v4424_v43, %v1800_v1  ;;  %v1832_v22 = vsub.f32 %v4422_v36, %v1800_v1 }
 0x454   : > { %3775 = vpow2.f32 %v1840_v0  ;;  %v1761_v2 = vpop.xlane.xlu0 %1760  ;;  %v1785_v3 = vpop.xlane.xlu1 %1784 }
 0x455   : > { %v4479_v6 = vpop.eup %3769  ;;  %v1818_v4 = vmul.f32 1.442695, %v1808_v50  ;;  %v1842_v7 = vmul.f32 1.442695, %v1832_v22  ;;  %v1801_v59 = vmax.f32 %v1761_v2, %v1785_v3 }
 0x456   : > { %v4481_v8 = vpop.eup %3771  ;;  %v1854_v33 = vsel %vm1749_vm5, %v4479_v6, 0.0 }
 0x457   : > { %3777 = vpow2.f32 %v1818_v4  ;;  %v1809_v10 = vsub.f32 %v4430_v49, %v1801_v59  ;;  %v1833_v43 = vsub.f32 %v4434_v56, %v1801_v59  ;;  %1855 = vadd.xlane.f32.xlu0 %v1854_v33  ;;  %v1878_v36 = vsel %vm1749_vm5, %v4481_v8, 0.0 }
 0x458   : > { %3779 = vpow2.f32 %v1842_v7  ;;  %1879 = vadd.xlane.f32.xlu1 %v1878_v36  ;;  %v1764_v13 = vpop.xlane.xlu0 %1763  ;;  %v1788_v14 = vpop.xlane.xlu1 %1787 }
 0x459   : > { %v1820_v15 = vmul.f32 1.442695, %v1809_v10  ;;  %v1844_v18 = vmul.f32 1.442695, %v1833_v43  ;;  %v1802_v19 = vmax.f32 %v1764_v13, %v1788_v14 }
 0x45b   : > { %3781 = vpow2.f32 %v1820_v15  ;;  %v1810_v21 = vsub.f32 %v4436_v62, %v1802_v19  ;;  %v1834_v23 = vsub.f32 %v4438_v63, %v1802_v19 }
 0x45c   : > { %3783 = vpow2.f32 %v1844_v18  ;;  %v1767_v49 = vpop.xlane.xlu0 %1766  ;;  %v1791_v25 = vpop.xlane.xlu1 %1790 }
 0x45d   : > { %v4491_v56 = vpop.eup %3773  ;;  %v1822_v12 = vmul.f32 1.442695, %v1810_v21  ;;  %v1846_v26 = vmul.f32 1.442695, %v1834_v23  ;;  %v1803_v28 = vmax.f32 %v1767_v49, %v1791_v25 }
 0x45e   : > { %v4493_v30 = vpop.eup %3775  ;;  %v1857_v31 = vsel %vm1749_vm5, %v4491_v56, 0.0 }
 0x45f   : > { %3785 = vpow2.f32 %v1822_v12  ;;  %v1811_v32 = vsub.f32 %v4444_v5, %v1803_v28  ;;  %v1835_v62 = vsub.f32 %v4450_v9, %v1803_v28  ;;  %1858 = vadd.xlane.f32.xlu0 %v1857_v31  ;;  %v1881_v63 = vsel %vm1749_vm5, %v4493_v30, 0.0 }
 0x460   : > { %3787 = vpow2.f32 %v1846_v26  ;;  %1882 = vadd.xlane.f32.xlu1 %v1881_v63  ;;  %v1770_v20 = vpop.xlane.xlu0 %1769  ;;  %v1794_v37 = vpop.xlane.xlu1 %1793 }
 0x461   : > { %v4501_v38 = vpop.eup %3777  ;;  %v1824_v39 = vmul.f32 1.442695, %v1811_v32  ;;  %v1848_v42 = vmul.f32 1.442695, %v1835_v62  ;;  %v1804_v44 = vmax.f32 %v1770_v20, %v1794_v37 }
 0x462   : > { %v4503_v46 = vpop.eup %3779  ;;  %v1860_v5 = vsel %vm1749_vm5, %v4501_v38, 0.0 }
 0x463   : > { %3789 = vpow2.f32 %v1824_v39  ;;  %v1812_v9 = vsub.f32 %v4452_v17, %v1804_v44  ;;  %v1836_v47 = vsub.f32 %v4454_v11, %v1804_v44  ;;  %1861 = vadd.xlane.f32.xlu0 %v1860_v5  ;;  %v1884_v48 = vsel %vm1749_vm5, %v4503_v46, 0.0 }
 0x464   : > { %3791 = vpow2.f32 %v1848_v42  ;;  %1885 = vadd.xlane.f32.xlu1 %v1884_v48  ;;  %v1773_v52 = vpop.xlane.xlu0 %1772  ;;  %v1797_v54 = vpop.xlane.xlu1 %1796  ;;  %v2044_v44 = vsel %vm1953_vm4, %v4326_v29, 0 }
 0x465   : > { %v4511_v55 = vpop.eup %3781  ;;  %v1826_v57 = vmul.f32 1.442695, %v1812_v9  ;;  %v1850_v58 = vmul.f32 1.442695, %v1836_v47  ;;  %v1805_v60 = vmax.f32 %v1773_v52, %v1797_v54 }
 0x466   : > { %v4513_v61 = vpop.eup %3783  ;;  %v1863_v17 = vsel %vm1749_vm5, %v4511_v55, 0.0 }
 0x467   : > { %3793 = vpow2.f32 %v1826_v57  ;;  %v1813_v11 = vsub.f32 %v4461_v24, %v1805_v60  ;;  %v1837_v0 = vsub.f32 %v4467_v27, %v1805_v60  ;;  %1864 = vadd.xlane.f32.xlu0 %v1863_v17  ;;  %v1887_v1 = vsel %vm1749_vm5, %v4513_v61, 0.0 }
 0x468   : > { %3795 = vpow2.f32 %v1850_v58  ;;  %1888 = vadd.xlane.f32.xlu1 %v1887_v1  ;;  %v2089_v60 = vsel %vm1953_vm4, %v4347_v34, 0 }
 0x469   : > { %v4521_v50 = vpop.eup %3785  ;;  %v1828_v22 = vmul.f32 1.442695, %v1813_v11  ;;  %v1852_v2 = vmul.f32 1.442695, %v1837_v0 }
 0x46a   : > { %v4523_v3 = vpop.eup %3787  ;;  %v1866_v4 = vsel %vm1749_vm5, %v4521_v50, 0.0 }
 0x46b   : > { %3797 = vpow2.f32 %v1828_v22  ;;  %1867 = vadd.xlane.f32.xlu0 %v1866_v4  ;;  %v1890_v24 = vsel %vm1749_vm5, %v4523_v3, 0.0 }
 0x46c   : > { %3799 = vpow2.f32 %v1852_v2  ;;  %1891 = vadd.xlane.f32.xlu1 %v1890_v24 }
 0x46d   : > { %v4529_v27 = vpop.eup %3789 }
 0x46e   : > { %v4531_v7 = vpop.eup %3791  ;;  %v1869_v59 = vsel %vm1749_vm5, %v4529_v27, 0.0 }
 0x46f   : > { %1870 = vadd.xlane.f32.xlu0 %v1869_v59  ;;  %v1893_v33 = vsel %vm1749_vm5, %v4531_v7, 0.0 }
 0x470   : > { %1894 = vadd.xlane.f32.xlu1 %v1893_v33 }
 0x471   : > { %v4537_v10 = vpop.eup %3793 }
 0x472   : > { %v4539_v43 = vpop.eup %3795  ;;  %v1872_v36 = vsel %vm1749_vm5, %v4537_v10, 0.0 }
 0x473   : > { %v1896_v13 = vsel %vm1749_vm5, %v4539_v43, 0.0  ;;  %1873 = vadd.xlane.f32.xlu0 %v1872_v36 }
 0x474   : > { %1897 = vadd.xlane.f32.xlu1 %v1896_v13 }
 0x475   : > { %v4545_v14 = vpop.eup %3797 }
 0x476   : > { %v4547_v15 = vpop.eup %3799  ;;  %v1875_v18 = vsel %vm1749_vm5, %v4545_v14, 0.0 }
 0x477   : > { %v1899_v19 = vsel %vm1749_vm5, %v4547_v15, 0.0  ;;  %1876 = vadd.xlane.f32.xlu0 %v1875_v18  ;;  %v2224_v18 = vsel %vm1953_vm4, %v4369_v41, 0 }
 0x478   : > { %1900 = vadd.xlane.f32.xlu1 %v1899_v19 }
 0x489   : > { %944 = vrot.lane.b32.xlu1 %v4236_v51, %s3943_s18 }
 0x48d   : > { %947 = vrot.lane.b32.xlu1 %v4236_v51, %s3945_s27  ;;  %941 = vrot.lane.b32.xlu0 %v4236_v51, %s3944_s4 }
 0x491   : > { %951 = vrot.lane.b32.xlu1 %v4238_v53, %s3944_s4  ;;  %954 = vrot.lane.b32.xlu0 %v4238_v53, %s3943_s18 }
 0x495   : > { %957 = vrot.lane.b32.xlu1 %v4238_v53, %s3945_s27 }
 0x4e4   : > { %v1856_v21 = vpop.xlane.xlu0 %1855 }
 0x4e5   : > { %v1880_v23 = vpop.xlane.xlu1 %1879 }
 0x4e6   : > { %v1902_v49 = vadd.f32 %v1880_v23, %v1856_v21  ;;  %v2269_v21 = vsel %vm1953_vm4, %v4385_v45, 0 }
 0x4e8   : > { %3801 = vrcp.f32 %v1902_v49 }
 0x4ec   : > { %v1859_v25 = vpop.xlane.xlu0 %1858 }
 0x4ed   : > { %v1883_v12 = vpop.xlane.xlu1 %1882 }
 0x4ee   : > { %v1903_v26 = vadd.f32 %v1883_v12, %v1859_v25 }
 0x4f0   : > { %3803 = vrcp.f32 %v1903_v26  ;;  %v1862_v28 = vpop.xlane.xlu0 %1861 }
 0x4f1   : > { %v1886_v31 = vpop.xlane.xlu1 %1885 }
 0x4f2   : > { %v4565_v32 = vpop.eup %3801  ;;  %v1904_v62 = vadd.f32 %v1886_v31, %v1862_v28 }
 0x4f3   : > { %v1934_v63 = vmul.f32 %v4565_v32, %v4481_v8 }
 0x4f4   : > { %3805 = vrcp.f32 %v1904_v62  ;;  %v1865_v20 = vpop.xlane.xlu0 %1864 }
 0x4f5   : > { %v1889_v37 = vpop.xlane.xlu1 %1888  ;;  %v1942_v39 = vpack.c.bf16 %v1934_v63, %v1934_v63 }
 0x4f6   : > { %v1905_v42 = vadd.f32 %v1889_v37, %v1865_v20 }
 0x4f7   : > { %3501 = vmatmul.mubr.msk.bf16.vlgmr.msra.gmra.mrb[36].mxu0 %vm1749_vm5, %v1942_v39 }
 0x4f8   : > { %3807 = vrcp.f32 %v1905_v42  ;;  %3511 = vmatpush3.bf16.msra.mxu0 %v2044_v44  ;;  %v1868_v5 = vpop.xlane.xlu0 %1867  ;;  %3512 = vmatprep.mubr.msk.bf16.mxu0 %vm3942_vm2, %v3941_v16  ;;  %v964_v42 = vpack.c.bf16 %v4238_v53, %v4238_v53 }
 0x4f9   : > { %v1892_v9 = vpop.xlane.xlu1 %1891  ;;  %3522 = vmatprep.subr.bf16.mxu0 %v3941_v16 }
 0x4fa   : > { %v4575_v8 = vpop.eup %3803  ;;  %v1906_v47 = vadd.f32 %v1892_v9, %v1868_v5 }
 0x4fb   : > { %v1935_v48 = vmul.f32 %v4575_v8, %v4493_v30  ;;  %v1919_v63 = vmul.f32 %v4575_v8, %v4491_v56  ;;  %v2499_v8 = vsel %vm1953_vm4, %v964_v42, 0 }
 0x4fc   : > { %3809 = vrcp.f32 %v1906_v47  ;;  %v1871_v52 = vpop.xlane.xlu0 %1870 }
 0x4fd   : > { %v1895_v29 = vpop.xlane.xlu1 %1894  ;;  %v1943_v54 = vpack.c.bf16 %v1935_v48, %v1935_v48  ;;  %v1927_v39 = vpack.c.bf16 %v1919_v63, %v1919_v63 }
 0x4fe   : > { %v4579_v57 = vpop.eup %3805  ;;  %v1907_v58 = vadd.f32 %v1895_v29, %v1871_v52 }
 0x4ff   : > { %v1936_v17 = vmul.f32 %v4579_v57, %v4503_v46  ;;  %3507 = vmatmul.mubr.msk.bf16.vlgmr.msra.gmra.mrb[36].mxu1 %vm1749_vm5, %v1943_v54  ;;  %v2134_v46 = vsel %vm1953_vm4, %v4351_v35, 0  ;;  %v1920_v37 = vmul.f32 %v4579_v57, %v4501_v38 }
 0x500   : > { %3811 = vrcp.f32 %v1907_v58  ;;  %3517 = vmatpush3.bf16.msra.mxu1 %v2089_v60  ;;  %v1874_v11 = vpop.xlane.xlu0 %1873  ;;  %3518 = vmatprep.mubr.msk.bf16.mxu1 %vm3942_vm2, %v3941_v16 }
 0x501   : > { %v1898_v30 = vpop.xlane.xlu1 %1897  ;;  %v1944_v0 = vpack.c.bf16 %v1936_v17, %v1936_v17  ;;  %3528 = vmatprep.subr.bf16.mxu1 %v3941_v16  ;;  %v1928_v9 = vpack.c.bf16 %v1920_v37, %v1920_v37 }
 0x502   : > { %v4589_v1 = vpop.eup %3807  ;;  %v1908_v22 = vadd.f32 %v1898_v30, %v1874_v11 }
 0x503   : > { %v1937_v34 = vmul.f32 %v4589_v1, %v4513_v61  ;;  %3513 = vmatmul.mubr.msk.bf16.vlgmr.msra.gmra.mrb[40].mxu0 %vm1749_vm5, %v1944_v0  ;;  %v2179_v61 = vsel %vm1953_vm4, %v4367_v40, 0  ;;  %v1921_v5 = vmul.f32 %v4589_v1, %v4511_v55  ;;  %v3755_v0 = vld [vmem:[%s4863_s16] sm:$0xff]  }
 0x504   : > { %3813 = vrcp.f32 %v1908_v22  ;;  %3523 = vmatpush3.bf16.msra.mxu0 %v2134_v46  ;;  %v1877_v2 = vpop.xlane.xlu0 %1876  ;;  %3524 = vmatprep.mubr.msk.bf16.mxu0 %vm3942_vm2, %v3941_v16 }
 0x505   : > { %v1901_v4 = vpop.xlane.xlu1 %1900  ;;  %v1945_v24 = vpack.c.bf16 %v1937_v34, %v1937_v34  ;;  %3534 = vmatprep.subr.bf16.mxu0 %v3941_v16  ;;  %v1929_v48 = vpack.c.bf16 %v1921_v5, %v1921_v5 }
 0x506   : > { %v4599_v59 = vpop.eup %3809  ;;  %v1909_v33 = vadd.f32 %v1901_v4, %v1877_v2 }
 0x507   : > { %v1938_v36 = vmul.f32 %v4599_v59, %v4523_v3  ;;  %3519 = vmatmul.mubr.msk.bf16.vlgmr.msra.gmra.mrb[40].mxu1 %vm1749_vm5, %v1945_v24  ;;  %v1922_v53 = vmul.f32 %v4599_v59, %v4521_v50 }
 0x508   : > { %3815 = vrcp.f32 %v1909_v33  ;;  %3529 = vmatpush3.bf16.msra.mxu1 %v2179_v61  ;;  %3530 = vmatprep.mubr.msk.bf16.mxu1 %vm3942_vm2, %v3941_v16  ;;  %v942_v23 = vpop.permute.xlu0 %941 }
 0x509   : > { %v1946_v35 = vpack.c.bf16 %v1938_v36, %v1938_v36  ;;  %3540 = vmatprep.subr.bf16.mxu1 %v3941_v16  ;;  %v945_v12 = vpop.permute.xlu1 %944  ;;  %v1930_v57 = vpack.c.bf16 %v1922_v53, %v1922_v53 }
 0x50a   : > { %v4609_v13 = vpop.eup %3811  ;;  %v962_v62 = vpack.c.bf16 %v945_v12, %v945_v12 }
 0x50b   : > { %v1939_v40 = vmul.f32 %v4609_v13, %v4531_v7  ;;  %3525 = vmatmul.mubr.msk.bf16.vlgmr.msra.gmra.mrb[44].mxu0 %vm1749_vm5, %v1946_v35  ;;  %v960_v7 = vpack.c.bf16 %v4236_v51, %v4236_v51  ;;  %v1918_v51 = vmul.f32 %v4565_v32, %v4479_v6  ;;  %v1923_v54 = vmul.f32 %v4609_v13, %v4529_v27  ;;  %v3756_v35 = vld [vmem:[%s4863_s16 + $0x8] sm:$0xff]  }
 0x50c   : > { %3535 = vmatpush3.bf16.msra.mxu0 %v2224_v18  ;;  %3536 = vmatprep.mubr.msk.bf16.mxu0 %vm3942_vm2, %v3941_v16  ;;  %v2407_v6 = vsel %vm1953_vm4, %v962_v62, 0  ;;  %v955_v47 = vpop.permute.xlu0 %954 }
 0x50d   : > { %v1947_v3 = vpack.c.bf16 %v1939_v40, %v1939_v40  ;;  %3546 = vmatprep.subr.bf16.mxu0 %v3941_v16  ;;  %v2315_v26 = vsel %vm1953_vm4, %v960_v7, 0  ;;  %v1926_v20 = vpack.c.bf16 %v1918_v51, %v1918_v51  ;;  %v966_v55 = vpack.c.bf16 %v955_v47, %v955_v47 }
 0x50e   : > { %v4619_v19 = vpop.eup %3813  ;;  %v1931_v17 = vpack.c.bf16 %v1923_v54, %v1923_v54 }
 0x50f   : > { %v1940_v41 = vmul.f32 %v4619_v19, %v4539_v43  ;;  %3531 = vmatmul.mubr.msk.bf16.vlgmr.msra.gmra.mrb[44].mxu1 %vm1749_vm5, %v1947_v3  ;;  %v961_v43 = vpack.c.bf16 %v942_v23, %v942_v23  ;;  %v2591_v50 = vsel %vm1953_vm4, %v966_v55, 0  ;;  %v1924_v60 = vmul.f32 %v4619_v19, %v4537_v10  ;;  %v3757_v19 = vld [vmem:[%s4863_s16 + $0x10] sm:$0xff]  }
 0x510   : > { %3541 = vmatpush3.bf16.msra.mxu1 %v2269_v21  ;;  %3542 = vmatprep.mubr.msk.bf16.mxu1 %vm3942_vm2, %v3941_v16 }
 0x511   : > { %v1948_v49 = vpack.c.bf16 %v1940_v41, %v1940_v41  ;;  %3552 = vmatprep.subr.bf16.mxu1 %v3941_v16  ;;  %v2361_v31 = vsel %vm1953_vm4, %v961_v43, 0  ;;  %v1932_v30 = vpack.c.bf16 %v1924_v60, %v1924_v60 }
 0x512   : > { %v4631_v25 = vpop.eup %3815 }
 0x513   : > { %v1941_v45 = vmul.f32 %v4631_v25, %v4547_v15  ;;  %3537 = vmatmul.mubr.msk.bf16.vlgmr.msra.gmra.mrb[48].mxu0 %vm1749_vm5, %v1948_v49  ;;  %v948_v15 = vpop.permute.xlu1 %947  ;;  %v1925_v11 = vmul.f32 %v4631_v25, %v4545_v14  ;;  %v3758_v49 = vld [vmem:[%s4863_s16 + $0x18] sm:$0xff]  }
 0x514   : > { %3547 = vmatpush3.bf16.msra.mxu0 %v2315_v26  ;;  %3548 = vmatprep.mubr.msk.bf16.mxu0 %vm3942_vm2, %v3941_v16  ;;  %v963_v32 = vpack.c.bf16 %v948_v15, %v948_v15 }
 0x515   : > { %v1949_v28 = vpack.c.bf16 %v1941_v45, %v1941_v45  ;;  %3558 = vmatprep.subr.bf16.mxu0 %v3941_v16  ;;  %v1933_v10 = vpack.c.bf16 %v1925_v11, %v1925_v11  ;;  %v3825_v11 = vld [vmem:[#allocation5] sm:$0xff] }
 0x516   : > { %v2453_v56 = vsel %vm1953_vm4, %v963_v32, 0 }
 0x517   : > { %3543 = vmatmul.mubr.msk.bf16.vlgmr.msra.gmra.mrb[48].mxu1 %vm1749_vm5, %v1949_v28  ;;  %v952_v44 = vpop.permute.xlu1 %951 }
 0x518   : > { %3553 = vmatpush3.bf16.msra.mxu1 %v2361_v31  ;;  %3554 = vmatprep.mubr.msk.bf16.mxu1 %vm3942_vm2, %v3941_v16  ;;  %v965_v38 = vpack.c.bf16 %v952_v44, %v952_v44 }
 0x519   : > { %3564 = vmatprep.subr.bf16.mxu1 %v3941_v16 }
 0x51a   : > { %v2545_v52 = vsel %vm1953_vm4, %v965_v38, 0 }
 0x51b   : > { %3549 = vmatmul.mubr.msk.bf16.vlgmr.msra.gmra.mrb[36].mxu0 %vm1749_vm5, %v1926_v20  ;;  %v958_v29 = vpop.permute.xlu1 %957 }
 0x51c   : > { %3559 = vmatpush3.bf16.msra.mxu0 %v2407_v6  ;;  %3560 = vmatprep.mubr.msk.bf16.mxu0 %vm3942_vm2, %v3941_v16  ;;  %v967_v58 = vpack.c.bf16 %v958_v29, %v958_v29 }
 0x51d   : > { %3570 = vmatprep.subr.bf16.mxu0 %v3941_v16 }
 0x51e   : > { %v2637_v27 = vsel %vm1953_vm4, %v967_v58, 0 }
 0x51f   : > { %3555 = vmatmul.mubr.msk.bf16.vlgmr.msra.gmra.mrb[36].mxu1 %vm1749_vm5, %v1927_v39 }
 0x520   : > { %3565 = vmatpush3.bf16.msra.mxu1 %v2453_v56  ;;  %3566 = vmatprep.mubr.msk.bf16.mxu1 %vm3942_vm2, %v3941_v16 }
 0x521   : > { %3576 = vmatprep.subr.bf16.mxu1 %v3941_v16 }
 0x523   : > { %3561 = vmatmul.mubr.msk.bf16.vlgmr.msra.gmra.mrb[40].mxu0 %vm1749_vm5, %v1928_v9 }
 0x524   : > { %3571 = vmatpush3.bf16.msra.mxu0 %v2499_v8  ;;  %3572 = vmatprep.mubr.msk.bf16.mxu0 %vm3942_vm2, %v3941_v16 }
 0x525   : > { %3582 = vmatprep.subr.bf16.mxu0 %v3941_v16 }
 0x527   : > { %3567 = vmatmul.mubr.msk.bf16.vlgmr.msra.gmra.mrb[40].mxu1 %vm1749_vm5, %v1929_v48 }
 0x528   : > { %3577 = vmatpush3.bf16.msra.mxu1 %v2545_v52  ;;  %3578 = vmatprep.mubr.msk.bf16.mxu1 %vm3942_vm2, %v3941_v16 }
 0x529   : > { %3588 = vmatprep.subr.bf16.mxu1 %v3941_v16 }
 0x52b   : > { %3573 = vmatmul.mubr.msk.bf16.vlgmr.msra.gmra.mrb[44].mxu0 %vm1749_vm5, %v1930_v57 }
 0x52c   : > { %3583 = vmatpush3.bf16.msra.mxu0 %v2591_v50  ;;  %3584 = vmatprep.mubr.msk.bf16.mxu0 %vm3942_vm2, %v3941_v16  ;;  %v3287_v50 = vld [vmem:[%s693_s24] ss:$0 sm:$0xff] }
 0x52d   : > { %3594 = vmatprep.subr.bf16.mxu0 %v3941_v16 }
 0x52f   : > { %3579 = vmatmul.mubr.msk.bf16.vlgmr.msra.gmra.mrb[44].mxu1 %vm1749_vm5, %v1931_v17 }
 0x530   : > { %3589 = vmatpush3.bf16.msra.mxu1 %v2637_v27  ;;  %3590 = vmatprep.mubr.msk.bf16.mxu1 %vm3942_vm2, %v3941_v16 }
 0x531   : > { %3606 = vmatprep.subr.bf16.mxu1 %v3941_v16 }
 0x533   : > { %3585 = vmatmul.mubr.msk.bf16.vlgmr.msra.gmra.mrb[48].mxu0 %vm1749_vm5, %v1932_v30 }
 0x534   : > { %3602 = vmatprep.mubr.msk.bf16.mxu0 %vm3942_vm2, %v3941_v16  ;;  %3595 = vmatpush3.bf16.msra.mxu0 %v3755_v0 }
 0x535   : > { %3596 = vmatprep.subr.bf16.mxu0 %v3941_v16 }
 0x537   : > { %3591 = vmatmul.mubr.msk.bf16.vlgmr.msra.gmra.mrb[48].mxu1 %vm1749_vm5, %v1933_v10 }
 0x538   : > { %3610 = vmatprep.mubr.msk.bf16.mxu1 %vm3942_vm2, %v3941_v16  ;;  %3597 = vmatpush3.bf16.msra.mxu0 %v3756_v35 }
 0x539   : > { %3598 = vmatprep.subr.bf16.mxu0 %v3941_v16 }
 0x53c   : > { %3599 = vmatpush3.bf16.msra.mxu0 %v3757_v19 }
 0x53d   : > { %3600 = vmatprep.subr.bf16.mxu0 %v3941_v16 }
 0x540   : > { %3601 = vmatpush3.bf16.msra.mxu0 %v3758_v49 }
 0x5ee   : > { %v2351_v14 = vpop.f32.mrb[36].mxu0 }
 0x5ef   : > { %v3550_v1 = vpop.f32.mrb[37].mxu0 }
 0x5f0   : > { %v2354_v22 = vpop.f32.mrb[38].mxu0 }
 0x5f1   : > { %v3551_v34 = vpop.f32.mrb[39].mxu0 }
 0x5f2   : > { %v2397_v46 = vpop.f32.mrb[36].mxu1 }
 0x5f3   : > { %v3556_v2 = vpop.f32.mrb[37].mxu1 }
 0x5f4   : > { %v2400_v4 = vpop.f32.mrb[38].mxu1 }
 0x5f5   : > { %v3557_v24 = vpop.f32.mrb[39].mxu1 }
 0x5f6   : > { %v2443_v59 = vpop.f32.mrb[40].mxu0 }
 0x5f7   : > { %v3562_v33 = vpop.f32.mrb[41].mxu0 }
 0x5f8   : > { %v2446_v61 = vpop.f32.mrb[42].mxu0  ;;  %v3760_v33 = vld [vmem:[%s4178_s5 + $0x8] sm:$0xff]  }
 0x5f9   : > { %v3563_v36 = vpop.f32.mrb[43].mxu0 }
 0x5fa   : > { %v2489_v13 = vpop.f32.mrb[40].mxu1 }
 0x5fb   : > { %v3568_v18 = vpop.f32.mrb[41].mxu1 }
 0x5fc   : > { %v2492_v40 = vpop.f32.mrb[42].mxu1 }
 0x5fd   : > { %v3569_v3 = vpop.f32.mrb[43].mxu1 }
 0x5fe   : > { %v2535_v21 = vpop.f32.mrb[44].mxu0 }
 0x5ff   : > { %v3574_v41 = vpop.f32.mrb[45].mxu0 }
 0x600   : > { %v2538_v7 = vpop.f32.mrb[46].mxu0 }
 0x601   : > { %v3575_v23 = vpop.f32.mrb[47].mxu0 }
 0x602   : > { %v2581_v25 = vpop.f32.mrb[44].mxu1 }
 0x603   : > { %v3732_v12 = vpack.i.bf16 %v2581_v25, %v2397_v46  ;;  %v3580_v45 = vpop.f32.mrb[45].mxu1 }
 0x604   : > { %v2584_v43 = vpop.f32.mrb[46].mxu1 }
 0x605   : > { %3733 = vrot.lane.b32.xlu0 %v3732_v12, %s3947_s14  ;;  %v3581_v26 = vpop.f32.mrb[47].mxu1 }
 0x606   : > { %v2627_v51 = vpop.f32.mrb[48].mxu0 }
 0x607   : > { %v3737_v28 = vpack.i.bf16 %v2627_v51, %v2443_v59  ;;  %v3586_v31 = vpop.f32.mrb[49].mxu0  ;;  %v3759_v59 = vld [vmem:[%s4178_s5] sm:$0xff]  }
 0x608   : > { %v2630_v62 = vpop.f32.mrb[50].mxu0  ;;  %3607 = vmatpush3.bf16.msra.mxu1 %v3759_v59 }
 0x609   : > { %3738 = vrot.lane.b32.xlu1 %v3737_v28, %s3948_s22  ;;  %v3587_v15 = vpop.f32.mrb[51].mxu0  ;;  %3608 = vmatprep.subr.bf16.mxu1 %v3941_v16  ;;  %v3293_v28 = vld [vmem:[%s696_s21] ss:$0 sm:$0xff] }
 0x60a   : > { %v2673_v63 = vpop.f32.mrb[48].mxu1 }
 0x60b   : > { %v3742_v20 = vpack.i.bf16 %v2673_v63, %v2489_v13  ;;  %v3592_v6 = vpop.f32.mrb[49].mxu1 }
 0x60c   : > { %v2676_v32 = vpop.f32.mrb[50].mxu1  ;;  %3609 = vmatpush3.bf16.msra.mxu1 %v3760_v33 }
 0x60d   : > { %3743 = vrot.lane.b32.xlu0 %v3742_v20, %s3949_s1  ;;  %v3593_v37 = vpop.f32.mrb[51].mxu1  ;;  %3614 = vmatprep.subr.bf16.mxu1 %v3941_v16  ;;  %v3294_v20 = vld [vmem:[%s699_s29] ss:$0 sm:$0xff] }
 0x677   : > { %v3734_v39 = vpop.permute.xlu0 %3733 }
 0x678   : > { %v3736_v42 = vunpack.i.h.bf16 %v3734_v39  ;;  %v3735_v44 = vunpack.i.l.bf16 %v3734_v39 }
 0x67a   : > { %v2691_v8 = vsel %vm999_vm3, %v2351_v14, %v3735_v44  ;;  %v2707_v47 = vsel %vm999_vm3, %v2535_v21, %v3736_v42  ;;  %v3826_v14 = vld [vmem:[#allocation5 + $0x8] sm:$0xff] }
 0x67b   : > { %v3739_v56 = vpop.permute.xlu1 %3738  ;;  %v3762_v42 = vld [vmem:[%s4187_s26 + $0x8] sm:$0xff]   ;;  %v3763_v44 = vld [vmem:[%s4187_s26 + $0x10] sm:$0xff]  }
 0x67c   : > { %v3741_v5 = vunpack.i.h.bf16 %v3739_v56  ;;  %v3740_v9 = vunpack.i.l.bf16 %v3739_v56  ;;  %v3761_v56 = vld [vmem:[%s4187_s26] sm:$0xff]  }
 0x67e   : > { %v2708_v55 = vsel %vm728_vm1, %v2707_v47, %v3741_v5  ;;  %v2692_v52 = vsel %vm728_vm1, %v2691_v8, %v3740_v9  ;;  %v3764_v5 = vld [vmem:[%s4187_s26 + $0x18] sm:$0xff]   ;;  %v3295_v9 = vld [vmem:[%s707_s6] ss:$0 sm:$0xff]  ;;  %s4865_s26 = sld [smem:[#allocation11_spill]]  ;;  %s3950_s6 = smov [#allocation5]  }
 0x67f   : > { %v3744_v38 = vpop.permute.xlu0 %3743  ;;  %s3022_s19 = sshll.u32 %s3950_s6, 4  ;;  %s3023_s19 = int_to_ptr.vmem [resolvable:$true] %s3022_s19 }
 0x680   : > { %v3746_v53 = vunpack.i.h.bf16 %v3744_v38  ;;  %v3745_v48 = vunpack.i.l.bf16 %v3744_v38  ;;  %s3857_s4 = scalar_lea.vmem %s3023_s19, 256  ;;  %p3864_p12 = scmp.lt.s32.totalorder %s3023_s19, %s3023_s19 }
 0x681   : > { %p3858_p11 = scmp.ne.s32.totalorder %s3023_s19, %s3857_s4  ;;  %p3865_p0 = scmp.lt.s32.totalorder %s3857_s4, %s3857_s4 }
 0x682   : > { %v2694_v29 = vsel %vm2693_vm6, %v2692_v52, %v3745_v48  ;;  %v2709_v54 = vsel %vm2693_vm6, %v2708_v55, %v3746_v53 }
 0x683   : > { %v2710_v57 = vpack.c.bf16 %v2709_v54, %v2694_v29  ;;  %p3866_p2 = por %p3865_p0, %p3864_p12 }
 0x684   : > { %s4866_s30 = sadd.s32 4294967295, %s4865_s26  }
 0x685   : > { %3603 = vmatmul.mubr.msk.bf16.vlgmr.msra.gmra.mrb[52].mxu0 %vm2750_vm7, %v2710_v57  ;;  %p4766_p9 = scmp.eq.s32.totalorder %s4866_s30, 1 }
 0x687   : > { %p3859_p6 = pnand %p3858_p11, %p4766_p9 }
 0x689   : > { %p3860_p8 = pneg %p3859_p6 }
 0x68b   : > { %p3867_p3 = pnand %p3866_p2, %p3860_p8 }
 0x758   : > { %v2788_v58 = vpop.f32.mrb[52].mxu0 }
 0x759   : > { %v2789_v60 = vadd.f32 %v3287_v50, %v2788_v58  ;;  %v3604_v17 = vpop.f32.mrb[53].mxu0 }
 0x75a   : > { %v2791_v27 = vpop.f32.mrb[54].mxu0 }
 0x75b   : > { %v4716_v30 = vadd.f32 %v3825_v11, %v2789_v60  ;;  %v2792_v10 = vadd.f32 %v3287_v50, %v2791_v27  ;;  %v3605_v0 = vpop.f32.mrb[55].mxu0 }
 0x75d   : > { %v4718_v1 = vadd.f32 %v3826_v14, %v2792_v10  ;;  %v2799_v22 = vsel %vm728_vm1, %v4716_v30, 0.0  ;;  %v2807_v46 = vmul.f32 %v4716_v30, %v4716_v30  ;;  %v3299_v10 = vld [vmem:[%s4864_s25] ss:$0 sm:$0xff] }
 0x75e   : > { %2800 = vadd.xlane.f32.xlu1 %v2799_v22 }
 0x75f   : > { %v2802_v34 = vsel %vm728_vm1, %v4718_v1, 0.0  ;;  %v2809_v2 = vsel %vm728_vm1, %v2807_v46, 0.0  ;;  %v2808_v4 = vmul.f32 %v4718_v1, %v4718_v1 }
 0x760   : > { %2803 = vadd.xlane.f32.xlu0 %v2802_v34 }
 0x761   : > { %v2812_v24 = vsel %vm728_vm1, %v2808_v4, 0.0 }
 0x764   : > { %2810 = vadd.xlane.f32.xlu0 %v2809_v2 }
 0x768   : > { %2813 = vadd.xlane.f32.xlu0 %v2812_v24 }
 0x7eb   : > { %v2801_v61 = vpop.xlane.xlu1 %2800 }
 0x7ec   : > { %v2805_v35 = vmul.f32 0.03125, %v2801_v61 }
 0x7ed   : > { %v2804_v36 = vpop.xlane.xlu0 %2803 }
 0x7ee   : > { %v2817_v18 = vmul.f32 %v2805_v35, %v2805_v35  ;;  %v2806_v40 = vmul.f32 0.03125, %v2804_v36  ;;  %v2823_v43 = vsub.f32 %v4716_v30, %v2805_v35 }
 0x7f0   : > { %v2818_v41 = vmul.f32 %v2806_v40, %v2806_v40  ;;  %v2824_v31 = vsub.f32 %v4718_v1, %v2806_v40 }
 0x7f1   : > { %v2811_v13 = vpop.xlane.xlu0 %2810 }
 0x7f2   : > { %v2815_v3 = vmul.f32 0.03125, %v2811_v13 }
 0x7f4   : > { %v2819_v19 = vsub.f32 %v2815_v3, %v2817_v18 }
 0x7f5   : > { %v2814_v21 = vpop.xlane.xlu0 %2813 }
 0x7f6   : > { %v2821_v7 = vmax.f32 %v2819_v19, 0.0  ;;  %v2816_v23 = vmul.f32 0.03125, %v2814_v21 }
 0x7f8   : > { %v2825_v49 = vadd.f32 1e-05, %v2821_v7  ;;  %v2820_v25 = vsub.f32 %v2816_v23, %v2818_v41 }
 0x7fa   : > { %3817 = vrsqrt.f32 %v2825_v49  ;;  %v2822_v12 = vmax.f32 %v2820_v25, 0.0 }
 0x7fc   : > { %v2826_v45 = vadd.f32 1e-05, %v2822_v12 }
 0x7fe   : > { %3819 = vrsqrt.f32 %v2826_v45 }
 0x804   : > { %v3818_v26 = vpop.eup %3817 }
 0x805   : > { %v2829_v51 = vmul.f32 %v3818_v26, %v2823_v43 }
 0x807   : > { %v2837_v63 = vmul.f32 %v3293_v28, %v2829_v51 }
 0x808   : > { %v3820_v62 = vpop.eup %3819 }
 0x809   : > { %v2830_v15 = vmul.f32 %v3820_v62, %v2824_v31  ;;  %v2845_v32 = vadd.f32 %v3294_v20, %v2837_v63 }
 0x80b   : > { %v2838_v6 = vmul.f32 %v3293_v28, %v2830_v15 }
 0x80d   : > { %v2846_v37 = vadd.f32 %v3294_v20, %v2838_v6 }
 0x80f   : > { %v2847_v39 = vpack.c.bf16 %v2846_v37, %v2845_v32 }
 0x811   : > { %3611 = vmatmul.mubr.msk.bf16.vlgmr.msra.gmra.mrb[52].mxu1 %vm728_vm1, %v2847_v39 }
 0x812   : > { %3622 = vmatprep.mubr.msk.bf16.mxu1 %vm3942_vm2, %v3941_v16  ;;  %3615 = vmatpush3.bf16.msra.mxu1 %v3761_v56 }
 0x813   : > { %3616 = vmatprep.subr.bf16.mxu1 %v3941_v16 }
 0x816   : > { %3617 = vmatpush3.bf16.msra.mxu1 %v3762_v42 }
 0x817   : > { %3618 = vmatprep.subr.bf16.mxu1 %v3941_v16 }
 0x81a   : > { %3619 = vmatpush3.bf16.msra.mxu1 %v3763_v44 }
 0x81b   : > { %3620 = vmatprep.subr.bf16.mxu1 %v3941_v16 }
 0x81e   : > { %3621 = vmatpush3.bf16.msra.mxu1 %v3764_v5 }
 0x8e4   : > { %v2908_v38 = vpop.f32.mrb[52].mxu1 }
 0x8e5   : > { %v2909_v8 = vadd.f32 %v3295_v9, %v2908_v38  ;;  %v3612_v47 = vpop.f32.mrb[53].mxu1 }
 0x8e6   : > { %v2911_v53 = vpop.f32.mrb[54].mxu1 }
 0x8e7   : > { %v2917_v48 = vmul.f32 0.70710677, %v2909_v8  ;;  %v2912_v55 = vadd.f32 %v3295_v9, %v2911_v53  ;;  %v3613_v52 = vpop.f32.mrb[55].mxu1  ;;  %v2915_v50 = vmul.f32 0.5, %v2909_v8 }
 0x8e9   : > { %3821 = verf.f32 %v2917_v48  ;;  %v2918_v29 = vmul.f32 0.70710677, %v2912_v55  ;;  %v2916_v58 = vmul.f32 0.5, %v2912_v55 }
 0x8eb   : > { %3823 = verf.f32 %v2918_v29 }
 0x8f3   : > { %v3822_v54 = vpop.eup %3821 }
 0x8f4   : > { %v2921_v16 = vadd.f32 1.0, %v3822_v54 }
 0x8f5   : > { %v3824_v57 = vpop.eup %3823 }
 0x8f6   : > { %v2922_v60 = vadd.f32 1.0, %v3824_v57  ;;  %v2923_v17 = vmul.f32 %v2921_v16, %v2915_v50 }
 0x8f8   : > { %v2924_v27 = vmul.f32 %v2922_v60, %v2916_v58 }
 0x8fa   : > { %v2925_v11 = vpack.c.bf16 %v2924_v27, %v2923_v17 }
 0x8fc   : > { %3623 = vmatmul.mubr.msk.bf16.vlgmr.msra.gmra.mrb[56].mxu1 %vm2750_vm7, %v2925_v11 }
 0x9cf   : > { %v3002_v0 = vpop.f32.mrb[56].mxu1 }
 0x9d0   : > { %v3003_v14 = vadd.f32 %v3299_v10, %v3002_v0  ;;  %v3624_v22 = vpop.f32.mrb[57].mxu1 }
 0x9d1   : > { %v3005_v34 = vpop.f32.mrb[58].mxu1 }
 0x9d2   : > { %v3009_v46 = vadd.f32 %v3003_v14, %v4716_v30  ;;  %v3006_v2 = vadd.f32 %v3299_v10, %v3005_v34  ;;  %v3625_v4 = vpop.f32.mrb[59].mxu1 }
 0x9d4   : > { %3011 = vst.msk [vmem:[#allocation5] sm:$0xff] %vm728_vm1, %v3009_v46  ;;  %v3010_v24 = vadd.f32 %v3006_v2, %v4718_v1 }
 0x9d6   : > { %3012 = vst.msk [vmem:[#allocation5 + $0x8] sm:$0xff] %vm728_vm1, %v3010_v24 }
 0x9d7   : > { %3870 = shalt.err (!%p3867_p3)
}
 0x9d8   : > { %s4868_s16 = sld [smem:[#allocation21_spill]] }
 0x9de   : > { %s4869_s14 = smov %s4868_s16  ;;  %s3871_s22 = scalar_lea.hbm %s4868_s16, 256 }
 0x9df   : > { %p3872_p4 = scmp.ne.s32.totalorder %s4869_s14, %s3871_s22  ;;  %p3877_p13 = scmp.lt.u32.totalorder %s3871_s22, %s4869_s14 }
 0x9e1   : > { %p3873_p1 = pnand %p3872_p4, %p4766_p9 }
 0x9e3   : > { %p3874_p5 = pneg %p3873_p1 }
 0x9e5   : > { %p3879_p10 = pnand %p3877_p13, %p3874_p5 }
 0x9e7   : > { %3882 = shalt.err (!%p3879_p10)
}
 0x9e8   : > { %s3951_s24 = smov 128   ;;  %s3952_s23 = smov 8  }
 0x9e9   : > { %3661 = dma.vmem_to_hbm [thread:$0]  (%p4766_p9), %s3023_s19, 256, %s4869_s14, [#allocation4], %s3951_s24, %s3951_s24, %s3952_s23  }
 0x9ea   : > { %3912 = dma.done.wait (%p4766_p9), [#allocation4], 256  }
 0x9eb   : > { %3914 = vsyncadd (%p4766_p9), [#allocation4], 4294967040 }
 0x9ec PF: > { %s4870_s21 = sld [smem:[#allocation11_spill]]  ;;  %s4871_s29 = sld [smem:[#allocation8_spill]] }
 0x9ed   : > { %s4872_s30 = sld [smem:[#allocation9_spill]]  ;;  %s4873_s15 = sld [smem:[#allocation13_spill]] }
 0x9ee   : > { %s4874_s16 = sld [smem:[#allocation10_spill]]  ;;  %s4875_s17 = sld [smem:[#allocation12_spill]] }
 0x9f2   : > { %s28_s18 = sadd.s32 1, %s4870_s21  }
 0x9f3   : > { %p25_p7 = scmp.ge.s32.totalorder %s28_s18, 4  }
 0x9f5   :  { %27 = sbr.rel (!%p25_p7) target bundleno = 12 (0xc), region = 157 }
 0x9fc   :  { %3038 = vsyncpa [#allocation3], 1 }
 0x9fd   :  { %3040 = vsyncpa [#allocation3 + $0x1], 1 }
 0x9fe   :  { %3041 = vsyncpa [#allocation4], 1 }
 0x9ff   :  { %3043 = vsyncpa [#allocation4 + $0x1], 1 }

</bundles_post_ra>
